<compile_context>
chip_gen: v5e
topology: v5e:2x2
jax: 0.10.0
libtpu: 0.0.40
codegen_flags: <defaults>
</compile_context>

<pallas_src>
import math

import jax
import jax.numpy as jnp
from jax import lax
from jax.experimental import pallas as pl
from jax.experimental.pallas import tpu as pltpu

# ----- small-scale configuration (mirrors the module's structure) -----
B_IN = 2                          # input batch
C_IN, H_IN, W_IN = 3, 16, 16
D_IN = C_IN * H_IN * W_IN         # 768  (stands in for 32*32*3 = 3072)
STARTING = 128                    # bottleneck width ("starting_size", 4000 in original)
N_DENSE = 5                       # the 5 hidden Linear+GELU layers

# output refold quirk: batch_size * channels * image_size^2 == B_IN * D_IN
OUT_BATCH, OUT_CHANNELS, OUT_IMAGE = 32, 3, 4
assert OUT_BATCH * OUT_CHANNELS * OUT_IMAGE * OUT_IMAGE == B_IN * D_IN

# Lane-dense tiles over D_IN for the k (reduction of matmul1) and n (output columns of
# the final matmul) grid axes.
K_TILE = 256
N_TILE = 256
assert D_IN % K_TILE == 0 and D_IN % N_TILE == 0
B_PAD = 8                         # pad M to a sublane multiple

_INV_SQRT2 = 1.0 / math.sqrt(2.0)


def _gelu(h):
    # Exact GELU (nn.GELU() default): 0.5*x*(1+erf(x/sqrt(2))), computed in f32.
    return 0.5 * h * (1.0 + lax.erf(h * _INV_SQRT2))


def _fc_encoder_kernel(x_ref, w1_ref, b1_ref, bns_ref, bnb_ref, wd_ref, bd_ref,
                       w2_ref, b2_ref, o_ref, h_acc, z_ref):
    # Grid: (n, k), k fastest.
    #   x_ref:   (B_PAD, K_TILE)            bf16
    #   w1_ref:  (K_TILE, STARTING)         bf16  (input_transform.weight.T tile)
    #   b1_ref:  (1, STARTING)              f32
    #   bns_ref: (1, STARTING)              f32   (folded BN scale)
    #   bnb_ref: (1, STARTING)              f32   (folded BN shift)
    #   wd_ref:  (N_DENSE, STARTING, STARTING) bf16 (dense_layers[i].weight.T)
    #   bd_ref:  (N_DENSE, 1, STARTING)     f32
    #   w2_ref:  (STARTING, N_TILE)         bf16  (d6.weight.T tile)
    #   b2_ref:  (1, N_TILE)                f32
    #   o_ref:   (B_PAD, N_TILE)            f32
    #   h_acc:   (B_PAD, STARTING)          f32 VMEM scratch (matmul1 accumulator)
    #   z_ref:   (B_PAD, STARTING)          f32 VMEM scratch (final hidden, persists)
    n = pl.program_id(0)
    k = pl.program_id(1)
    num_k = pl.num_programs(1)

    @pl.when(jnp.logical_and(n == 0, k == 0))
    def _():
        h_acc[...] = jnp.zeros_like(h_acc)

    # First matmul reduction only happens on the n == 0 sweep.
    @pl.when(n == 0)
    def _():
        h_acc[...] += jnp.dot(x_ref[...], w1_ref[...],
                              preferred_element_type=jnp.float32)

    @pl.when(k == num_k - 1)
    def _():
        # Hidden chain computed exactly once (bias added once, not per k step).
        @pl.when(n == 0)
        def _():
            h = _gelu(h_acc[...] + b1_ref[...])
            h = h * bns_ref[...] + bnb_ref[...]          # eval-mode BatchNorm1d
            for i in range(N_DENSE):
                h = jnp.dot(h.astype(jnp.bfloat16), wd_ref[i],
                            preferred_element_type=jnp.float32) + bd_ref[i]
                h = _gelu(h)
            z_ref[...] = h

        # d6 output tile for this n: bf16 operands, f32 accumulate + f32 bias.
        out = jnp.dot(z_ref[...].astype(jnp.bfloat16), w2_ref[...],
                      preferred_element_type=jnp.float32) + b2_ref[...]
        o_ref[...] = out.astype(o_ref.dtype)


def fc_encoder_forward(x_nchw, w1_t, b1, bn_gamma, bn_beta, bn_mean, bn_var,
                       wd_t, bd, w2_t, b2, *, bn_eps=1e-5):
    """x_nchw: (B, C, H, W) f32 -> (OUT_BATCH, OUT_CHANNELS, OUT_IMAGE, OUT_IMAGE) f32."""
    b = x_nchw.shape[0]
    # torch.flatten(x, start_dim=1); MXU operands cast to bf16 once in the wrapper.
    x_flat = x_nchw.reshape(b, -1).astype(jnp.bfloat16)
    w1_bf = w1_t.astype(jnp.bfloat16)
    wd_bf = wd_t.astype(jnp.bfloat16)
    w2_bf = w2_t.astype(jnp.bfloat16)

    # Fold eval-mode BatchNorm1d into a per-feature scale/shift (f32).
    inv_std = 1.0 / jnp.sqrt(bn_var + bn_eps)
    bn_scale = (bn_gamma * inv_std).reshape(1, STARTING).astype(jnp.float32)
    bn_shift = (bn_beta - bn_mean * bn_gamma * inv_std).reshape(1, STARTING).astype(jnp.float32)

    # Pad M to a sublane multiple (8); padded rows are sliced off afterwards.
    b_pad = max(B_PAD, ((b + 7) // 8) * 8)
    if b_pad != b:
        x_flat = jnp.pad(x_flat, ((0, b_pad - b), (0, 0)))

    n_tiles = D_IN // N_TILE
    k_tiles = D_IN // K_TILE

    # Advisory cost estimate (this call is overhead/DMA-bound at toy shapes).
    flops = (2 * b_pad * D_IN * STARTING
             + N_DENSE * 2 * b_pad * STARTING * STARTING
             + 2 * b_pad * STARTING * D_IN)
    transcendentals = b_pad * STARTING * (N_DENSE + 1)
    bytes_accessed = (x_flat.size * 2 + w1_bf.size * 2 + wd_bf.size * 2 + w2_bf.size * 2
                      + (b1.size + bd.size + b2.size + 2 * STARTING) * 4
                      + b_pad * D_IN * 4)
    cost = pl.CostEstimate(flops=int(flops),
                           transcendentals=int(transcendentals),
                           bytes_accessed=int(bytes_accessed))

    out_flat = pl.pallas_call(
        _fc_encoder_kernel,
        out_shape=jax.ShapeDtypeStruct((b_pad, D_IN), jnp.float32),
        grid_spec=pltpu.PrefetchScalarGridSpec(
            num_scalar_prefetch=0,
            grid=(n_tiles, k_tiles),
            in_specs=[
                # x / w1: only consumed on the n == 0 sweep; freeze their block index
                # for n > 0 so Pallas skips the redundant re-DMA of those tiles.
                pl.BlockSpec((b_pad, K_TILE),
                             lambda n, k: (0, jnp.where(n == 0, k, 0))),
                pl.BlockSpec((K_TILE, STARTING),
                             lambda n, k: (jnp.where(n == 0, k, 0), 0)),
                pl.BlockSpec((1, STARTING), lambda n, k: (0, 0)),              # b1
                pl.BlockSpec((1, STARTING), lambda n, k: (0, 0)),              # bn scale
                pl.BlockSpec((1, STARTING), lambda n, k: (0, 0)),              # bn shift
                pl.BlockSpec((N_DENSE, STARTING, STARTING),
                             lambda n, k: (0, 0, 0)),                          # dense W
                pl.BlockSpec((N_DENSE, 1, STARTING), lambda n, k: (0, 0, 0)),  # dense b
                pl.BlockSpec((STARTING, N_TILE), lambda n, k: (0, n)),         # w2 tile
                pl.BlockSpec((1, N_TILE), lambda n, k: (0, n)),                # b2 tile
            ],
            out_specs=pl.BlockSpec((b_pad, N_TILE), lambda n, k: (0, n)),
            scratch_shapes=[pltpu.VMEM((b_pad, STARTING), jnp.float32),   # h_acc
                            pltpu.VMEM((b_pad, STARTING), jnp.float32)],  # z (hidden)
        ),
        compiler_params=pltpu.CompilerParams(
            # Both axes sequential: the hidden chain is computed once into core-local
            # VMEM and reused for every n tile. Safe on all generations' VMEM limits.
            dimension_semantics=("arbitrary", "arbitrary"),
            vmem_limit_bytes=32 * 1024 * 1024,
        ),
        cost_estimate=cost,
    )(x_flat, w1_bf, b1, bn_scale, bn_shift, wd_bf, bd, w2_bf, b2)

    # Drop padded rows; the (B, D_IN) -> NCHW refold stays OUTSIDE the kernel
    # (pure row-major reinterpretation; kernel stores stay lane-dense).
    out_flat = out_flat[:b]
    return out_flat.reshape(OUT_BATCH, OUT_CHANNELS, OUT_IMAGE, OUT_IMAGE)


def _reference(x_nchw, w1_t, b1, bn_gamma, bn_beta, bn_mean, bn_var,
               wd_t, bd, w2_t, b2, *, bn_eps=1e-5):
    # Same bf16-operand / f32-accumulate numerics as the kernel.
    x = x_nchw.reshape(x_nchw.shape[0], -1).astype(jnp.bfloat16)
    h = jnp.dot(x, w1_t.astype(jnp.bfloat16), preferred_element_type=jnp.float32) + b1
    h = jax.nn.gelu(h, approximate=False)
    scale = bn_gamma / jnp.sqrt(bn_var + bn_eps)
    h = h * scale.reshape(1, -1) + (bn_beta - bn_mean * scale).reshape(1, -1)
    for i in range(N_DENSE):
        h = jnp.dot(h.astype(jnp.bfloat16), wd_t[i].astype(jnp.bfloat16),
                    preferred_element_type=jnp.float32) + bd[i]
        h = jax.nn.gelu(h, approximate=False)
    o = jnp.dot(h.astype(jnp.bfloat16), w2_t.astype(jnp.bfloat16),
                preferred_element_type=jnp.float32) + b2
    return o.reshape(OUT_BATCH, OUT_CHANNELS, OUT_IMAGE, OUT_IMAGE)


if __name__ == "__main__":
    key = jax.random.PRNGKey(0)
    (k_x, k_w1, k_b1, k_g, k_be, k_m, k_v,
     k_wd, k_bd, k_w2, k_b2) = jax.random.split(key, 11)

    # Deterministic parameter init (PyTorch Linear uniform bounds); weights stored
    # pre-transposed as (in_features, out_features).
    bound1 = 1.0 / math.sqrt(D_IN)
    bound_s = 1.0 / math.sqrt(STARTING)
    w1_t = jax.random.uniform(k_w1, (D_IN, STARTING), jnp.float32, -bound1, bound1)
    b1 = jax.random.uniform(k_b1, (1, STARTING), jnp.float32, -bound1, bound1)
    bn_gamma = jax.random.uniform(k_g, (STARTING,), jnp.float32, 0.5, 1.5)
    bn_beta = jax.random.uniform(k_be, (STARTING,), jnp.float32, -0.1, 0.1)
    bn_mean = jax.random.uniform(k_m, (STARTING,), jnp.float32, -0.1, 0.1)
    bn_var = jax.random.uniform(k_v, (STARTING,), jnp.float32, 0.5, 1.5)
    wd_t = jax.random.uniform(k_wd, (N_DENSE, STARTING, STARTING), jnp.float32,
                              -bound_s, bound_s)
    bd = jax.random.uniform(k_bd, (N_DENSE, 1, STARTING), jnp.float32, -bound_s, bound_s)
    w2_t = jax.random.uniform(k_w2, (STARTING, D_IN), jnp.float32, -bound_s, bound_s)
    b2 = jax.random.uniform(k_b2, (1, D_IN), jnp.float32, -bound_s, bound_s)

    x = jax.random.normal(k_x, (B_IN, C_IN, H_IN, W_IN), jnp.float32)

    out = fc_encoder_forward(x, w1_t, b1, bn_gamma, bn_beta, bn_mean, bn_var,
                             wd_t, bd, w2_t, b2)
    out = jax.block_until_ready(out)

    ref = _reference(x, w1_t, b1, bn_gamma, bn_beta, bn_mean, bn_var,
                     wd_t, bd, w2_t, b2)
    assert out.shape == (OUT_BATCH, OUT_CHANNELS, OUT_IMAGE, OUT_IMAGE)
    err = float(jnp.max(jnp.abs(out - ref)))
    assert err < 1e-2, f"max abs err={err}"

    print("KERNEL_OK")
</pallas_src>

<mosaic_0001>
module attributes {stable_mosaic.version = 11 : i64} {
  func.func @_fc_encoder_kernel(%arg0: i32, %arg1: i32, %arg2: memref<8x256xbf16, #tpu.memory_space<vmem>>, %arg3: memref<256x128xbf16, #tpu.memory_space<vmem>>, %arg4: memref<1x128xf32, #tpu.memory_space<vmem>>, %arg5: memref<1x128xf32, #tpu.memory_space<vmem>>, %arg6: memref<1x128xf32, #tpu.memory_space<vmem>>, %arg7: memref<5x128x128xbf16, #tpu.memory_space<vmem>>, %arg8: memref<5x1x128xf32, #tpu.memory_space<vmem>>, %arg9: memref<128x256xbf16, #tpu.memory_space<vmem>>, %arg10: memref<1x256xf32, #tpu.memory_space<vmem>>, %arg11: memref<8x256xf32, #tpu.memory_space<vmem>>, %arg12: memref<8x128xf32, #tpu.memory_space<vmem>>, %arg13: memref<8x128xf32, #tpu.memory_space<vmem>>) attributes {dimension_semantics = [#tpu.dimension_semantics<arbitrary>, #tpu.dimension_semantics<arbitrary>], iteration_bounds = array<i64: 3, 3>, scalar_prefetch = 0 : i64, scratch_operands = 2 : i64, tpu.core_type = #tpu.core_type<tc>, window_params = [{transform_indices = @transform_0, window_bounds = array<i64: 8, 256>}, {transform_indices = @transform_1, window_bounds = array<i64: 256, 128>}, {pipeline_mode = #tpu.pipeline_mode<synchronous>, transform_indices = @transform_2, window_bounds = array<i64: 1, 128>}, {pipeline_mode = #tpu.pipeline_mode<synchronous>, transform_indices = @transform_3, window_bounds = array<i64: 1, 128>}, {pipeline_mode = #tpu.pipeline_mode<synchronous>, transform_indices = @transform_4, window_bounds = array<i64: 1, 128>}, {pipeline_mode = #tpu.pipeline_mode<synchronous>, transform_indices = @transform_5, window_bounds = array<i64: 5, 128, 128>}, {pipeline_mode = #tpu.pipeline_mode<synchronous>, transform_indices = @transform_6, window_bounds = array<i64: 5, 1, 128>}, {transform_indices = @transform_7, window_bounds = array<i64: 128, 256>}, {transform_indices = @transform_8, window_bounds = array<i64: 1, 256>}, {transform_indices = @transform_9, window_bounds = array<i64: 8, 256>}]} {
    %c0_i32 = arith.constant 0 : i32
    %0 = arith.cmpi eq, %arg0, %c0_i32 : i32
    %c0_i32_0 = arith.constant 0 : i32
    %1 = arith.cmpi eq, %arg1, %c0_i32_0 : i32
    %2 = arith.andi %0, %1 : i1
    %3 = arith.extui %2 : i1 to i32
    %c0_i32_1 = arith.constant 0 : i32
    %4 = arith.cmpi ne, %3, %c0_i32_1 : i32
    scf.if %4 {
      %cst = arith.constant 0.000000e+00 : f32
      %11 = vector.broadcast %cst : f32 to vector<8x128xf32>
      %c0 = arith.constant 0 : index
      %c0_5 = arith.constant 0 : index
      %12 = vector.load %arg12[%c0, %c0_5] : memref<8x128xf32, #tpu.memory_space<vmem>>, vector<8x128xf32>
      tpu.vector_store %arg12[%c0, %c0_5], %11 {strides = array<i32>} : memref<8x128xf32, #tpu.memory_space<vmem>>, vector<8x128xf32>,
    } else {
    }
    %c0_i32_2 = arith.constant 0 : i32
    %5 = arith.cmpi eq, %arg0, %c0_i32_2 : i32
    %6 = arith.extui %5 : i1 to i32
    %c0_i32_3 = arith.constant 0 : i32
    %7 = arith.cmpi ne, %6, %c0_i32_3 : i32
    scf.if %7 {
      %c0 = arith.constant 0 : index
      %c0_5 = arith.constant 0 : index
      %11 = vector.load %arg12[%c0, %c0_5] : memref<8x128xf32, #tpu.memory_space<vmem>>, vector<8x128xf32>
      %c0_6 = arith.constant 0 : index
      %c0_7 = arith.constant 0 : index
      %12 = vector.load %arg2[%c0_6, %c0_7] : memref<8x256xbf16, #tpu.memory_space<vmem>>, vector<8x256xbf16>
      %c0_8 = arith.constant 0 : index
      %c0_9 = arith.constant 0 : index
      %13 = vector.load %arg3[%c0_8, %c0_9] : memref<256x128xbf16, #tpu.memory_space<vmem>>, vector<256x128xbf16>
      %cst = arith.constant dense<0.000000e+00> : vector<8x128xf32>
      %14 = tpu.matmul %12, %13, %cst {dimension_numbers = #tpu.dot_dimension_numbers<[1], [0], [0], [1], [0, 0, 1, 1], [], []>} : vector<8x256xbf16>, vector<256x128xbf16>, vector<8x128xf32> -> vector<8x128xf32>
      %15 = arith.addf %11, %14 : vector<8x128xf32>
      %c0_10 = arith.constant 0 : index
      %c0_11 = arith.constant 0 : index
      %16 = vector.load %arg12[%c0_10, %c0_11] : memref<8x128xf32, #tpu.memory_space<vmem>>, vector<8x128xf32>
      tpu.vector_store %arg12[%c0_10, %c0_11], %15 {strides = array<i32>} : memref<8x128xf32, #tpu.memory_space<vmem>>, vector<8x128xf32>,
    } else {
    }
    %c2_i32 = arith.constant 2 : i32
    %8 = arith.cmpi eq, %arg1, %c2_i32 : i32
    %9 = arith.extui %8 : i1 to i32
    %c0_i32_4 = arith.constant 0 : i32
    %10 = arith.cmpi ne, %9, %c0_i32_4 : i32
    scf.if %10 {
      %c0_i32_5 = arith.constant 0 : i32
      %11 = arith.cmpi eq, %arg0, %c0_i32_5 : i32
      %12 = arith.extui %11 : i1 to i32
      %c0_i32_6 = arith.constant 0 : i32
      %13 = arith.cmpi ne, %12, %c0_i32_6 : i32
      scf.if %13 {
        %c0_14 = arith.constant 0 : index
        %c0_15 = arith.constant 0 : index
        %22 = vector.load %arg12[%c0_14, %c0_15] : memref<8x128xf32, #tpu.memory_space<vmem>>, vector<8x128xf32>
        %c0_16 = arith.constant 0 : index
        %c0_17 = arith.constant 0 : index
        %23 = vector.load %arg4[%c0_16, %c0_17] : memref<1x128xf32, #tpu.memory_space<vmem>>, vector<1x128xf32>
        %24 = vector.broadcast %23 : vector<1x128xf32> to vector<8x128xf32>
        %25 = arith.addf %22, %24 : vector<8x128xf32>
        %cst_18 = arith.constant 5.000000e-01 : f32
        %26 = vector.broadcast %cst_18 : f32 to vector<8x128xf32>
        %27 = arith.mulf %26, %25 : vector<8x128xf32>
        %cst_19 = arith.constant 0.707106769 : f32
        %28 = vector.broadcast %cst_19 : f32 to vector<8x128xf32>
        %29 = arith.mulf %25, %28 : vector<8x128xf32>
        %30 = math.erf %29 : vector<8x128xf32>
        %cst_20 = arith.constant 1.000000e+00 : f32
        %31 = vector.broadcast %cst_20 : f32 to vector<8x128xf32>
        %32 = arith.addf %31, %30 : vector<8x128xf32>
        %33 = arith.mulf %27, %32 : vector<8x128xf32>
        %c0_21 = arith.constant 0 : index
        %c0_22 = arith.constant 0 : index
        %34 = vector.load %arg5[%c0_21, %c0_22] : memref<1x128xf32, #tpu.memory_space<vmem>>, vector<1x128xf32>
        %35 = vector.broadcast %34 : vector<1x128xf32> to vector<8x128xf32>
        %36 = arith.mulf %33, %35 : vector<8x128xf32>
        %c0_23 = arith.constant 0 : index
        %c0_24 = arith.constant 0 : index
        %37 = vector.load %arg6[%c0_23, %c0_24] : memref<1x128xf32, #tpu.memory_space<vmem>>, vector<1x128xf32>
        %38 = vector.broadcast %37 : vector<1x128xf32> to vector<8x128xf32>
        %39 = arith.addf %36, %38 : vector<8x128xf32>
        %40 = arith.truncf %39 : vector<8x128xf32> to vector<8x128xbf16>
        %c0_25 = arith.constant 0 : index
        %c0_26 = arith.constant 0 : index
        %c0_27 = arith.constant 0 : index
        %41 = vector.load %arg7[%c0_25, %c0_26, %c0_27] : memref<5x128x128xbf16, #tpu.memory_space<vmem>>, vector<1x128x128xbf16>
        %42 = vector.shape_cast %41 : vector<1x128x128xbf16> to vector<128x128xbf16>
        %cst_28 = arith.constant dense<0.000000e+00> : vector<8x128xf32>
        %43 = tpu.matmul %40, %42, %cst_28 {dimension_numbers = #tpu.dot_dimension_numbers<[1], [0], [0], [1], [0, 0, 1, 1], [], []>} : vector<8x128xbf16>, vector<128x128xbf16>, vector<8x128xf32> -> vector<8x128xf32>
        %c0_29 = arith.constant 0 : index
        %c0_30 = arith.constant 0 : index
        %c0_31 = arith.constant 0 : index
        %44 = vector.load %arg8[%c0_29, %c0_30, %c0_31] : memref<5x1x128xf32, #tpu.memory_space<vmem>>, vector<1x1x128xf32>
        %45 = vector.shape_cast %44 : vector<1x1x128xf32> to vector<1x128xf32>
        %46 = vector.broadcast %45 : vector<1x128xf32> to vector<8x128xf32>
        %47 = arith.addf %43, %46 : vector<8x128xf32>
        %cst_32 = arith.constant 5.000000e-01 : f32
        %48 = vector.broadcast %cst_32 : f32 to vector<8x128xf32>
        %49 = arith.mulf %48, %47 : vector<8x128xf32>
        %cst_33 = arith.constant 0.707106769 : f32
        %50 = vector.broadcast %cst_33 : f32 to vector<8x128xf32>
        %51 = arith.mulf %47, %50 : vector<8x128xf32>
        %52 = math.erf %51 : vector<8x128xf32>
        %cst_34 = arith.constant 1.000000e+00 : f32
        %53 = vector.broadcast %cst_34 : f32 to vector<8x128xf32>
        %54 = arith.addf %53, %52 : vector<8x128xf32>
        %55 = arith.mulf %49, %54 : vector<8x128xf32>
        %56 = arith.truncf %55 : vector<8x128xf32> to vector<8x128xbf16>
        %c1 = arith.constant 1 : index
        %c0_35 = arith.constant 0 : index
        %c0_36 = arith.constant 0 : index
        %57 = vector.load %arg7[%c1, %c0_35, %c0_36] : memref<5x128x128xbf16, #tpu.memory_space<vmem>>, vector<1x128x128xbf16>
        %58 = vector.shape_cast %57 : vector<1x128x128xbf16> to vector<128x128xbf16>
        %cst_37 = arith.constant dense<0.000000e+00> : vector<8x128xf32>
        %59 = tpu.matmul %56, %58, %cst_37 {dimension_numbers = #tpu.dot_dimension_numbers<[1], [0], [0], [1], [0, 0, 1, 1], [], []>} : vector<8x128xbf16>, vector<128x128xbf16>, vector<8x128xf32> -> vector<8x128xf32>
        %c1_38 = arith.constant 1 : index
        %c0_39 = arith.constant 0 : index
        %c0_40 = arith.constant 0 : index
        %60 = vector.load %arg8[%c1_38, %c0_39, %c0_40] : memref<5x1x128xf32, #tpu.memory_space<vmem>>, vector<1x1x128xf32>
        %61 = vector.shape_cast %60 : vector<1x1x128xf32> to vector<1x128xf32>
        %62 = vector.broadcast %61 : vector<1x128xf32> to vector<8x128xf32>
        %63 = arith.addf %59, %62 : vector<8x128xf32>
        %cst_41 = arith.constant 5.000000e-01 : f32
        %64 = vector.broadcast %cst_41 : f32 to vector<8x128xf32>
        %65 = arith.mulf %64, %63 : vector<8x128xf32>
        %cst_42 = arith.constant 0.707106769 : f32
        %66 = vector.broadcast %cst_42 : f32 to vector<8x128xf32>
        %67 = arith.mulf %63, %66 : vector<8x128xf32>
        %68 = math.erf %67 : vector<8x128xf32>
        %cst_43 = arith.constant 1.000000e+00 : f32
        %69 = vector.broadcast %cst_43 : f32 to vector<8x128xf32>
        %70 = arith.addf %69, %68 : vector<8x128xf32>
        %71 = arith.mulf %65, %70 : vector<8x128xf32>
        %72 = arith.truncf %71 : vector<8x128xf32> to vector<8x128xbf16>
        %c2 = arith.constant 2 : index
        %c0_44 = arith.constant 0 : index
        %c0_45 = arith.constant 0 : index
        %73 = vector.load %arg7[%c2, %c0_44, %c0_45] : memref<5x128x128xbf16, #tpu.memory_space<vmem>>, vector<1x128x128xbf16>
        %74 = vector.shape_cast %73 : vector<1x128x128xbf16> to vector<128x128xbf16>
        %cst_46 = arith.constant dense<0.000000e+00> : vector<8x128xf32>
        %75 = tpu.matmul %72, %74, %cst_46 {dimension_numbers = #tpu.dot_dimension_numbers<[1], [0], [0], [1], [0, 0, 1, 1], [], []>} : vector<8x128xbf16>, vector<128x128xbf16>, vector<8x128xf32> -> vector<8x128xf32>
        %c2_47 = arith.constant 2 : index
        %c0_48 = arith.constant 0 : index
        %c0_49 = arith.constant 0 : index
        %76 = vector.load %arg8[%c2_47, %c0_48, %c0_49] : memref<5x1x128xf32, #tpu.memory_space<vmem>>, vector<1x1x128xf32>
        %77 = vector.shape_cast %76 : vector<1x1x128xf32> to vector<1x128xf32>
        %78 = vector.broadcast %77 : vector<1x128xf32> to vector<8x128xf32>
        %79 = arith.addf %75, %78 : vector<8x128xf32>
        %cst_50 = arith.constant 5.000000e-01 : f32
        %80 = vector.broadcast %cst_50 : f32 to vector<8x128xf32>
        %81 = arith.mulf %80, %79 : vector<8x128xf32>
        %cst_51 = arith.constant 0.707106769 : f32
        %82 = vector.broadcast %cst_51 : f32 to vector<8x128xf32>
        %83 = arith.mulf %79, %82 : vector<8x128xf32>
        %84 = math.erf %83 : vector<8x128xf32>
        %cst_52 = arith.constant 1.000000e+00 : f32
        %85 = vector.broadcast %cst_52 : f32 to vector<8x128xf32>
        %86 = arith.addf %85, %84 : vector<8x128xf32>
        %87 = arith.mulf %81, %86 : vector<8x128xf32>
        %88 = arith.truncf %87 : vector<8x128xf32> to vector<8x128xbf16>
        %c3 = arith.constant 3 : index
        %c0_53 = arith.constant 0 : index
        %c0_54 = arith.constant 0 : index
        %89 = vector.load %arg7[%c3, %c0_53, %c0_54] : memref<5x128x128xbf16, #tpu.memory_space<vmem>>, vector<1x128x128xbf16>
        %90 = vector.shape_cast %89 : vector<1x128x128xbf16> to vector<128x128xbf16>
        %cst_55 = arith.constant dense<0.000000e+00> : vector<8x128xf32>
        %91 = tpu.matmul %88, %90, %cst_55 {dimension_numbers = #tpu.dot_dimension_numbers<[1], [0], [0], [1], [0, 0, 1, 1], [], []>} : vector<8x128xbf16>, vector<128x128xbf16>, vector<8x128xf32> -> vector<8x128xf32>
        %c3_56 = arith.constant 3 : index
        %c0_57 = arith.constant 0 : index
        %c0_58 = arith.constant 0 : index
        %92 = vector.load %arg8[%c3_56, %c0_57, %c0_58] : memref<5x1x128xf32, #tpu.memory_space<vmem>>, vector<1x1x128xf32>
        %93 = vector.shape_cast %92 : vector<1x1x128xf32> to vector<1x128xf32>
        %94 = vector.broadcast %93 : vector<1x128xf32> to vector<8x128xf32>
        %95 = arith.addf %91, %94 : vector<8x128xf32>
        %cst_59 = arith.constant 5.000000e-01 : f32
        %96 = vector.broadcast %cst_59 : f32 to vector<8x128xf32>
        %97 = arith.mulf %96, %95 : vector<8x128xf32>
        %cst_60 = arith.constant 0.707106769 : f32
        %98 = vector.broadcast %cst_60 : f32 to vector<8x128xf32>
        %99 = arith.mulf %95, %98 : vector<8x128xf32>
        %100 = math.erf %99 : vector<8x128xf32>
        %cst_61 = arith.constant 1.000000e+00 : f32
        %101 = vector.broadcast %cst_61 : f32 to vector<8x128xf32>
        %102 = arith.addf %101, %100 : vector<8x128xf32>
        %103 = arith.mulf %97, %102 : vector<8x128xf32>
        %104 = arith.truncf %103 : vector<8x128xf32> to vector<8x128xbf16>
        %c4 = arith.constant 4 : index
        %c0_62 = arith.constant 0 : index
        %c0_63 = arith.constant 0 : index
        %105 = vector.load %arg7[%c4, %c0_62, %c0_63] : memref<5x128x128xbf16, #tpu.memory_space<vmem>>, vector<1x128x128xbf16>
        %106 = vector.shape_cast %105 : vector<1x128x128xbf16> to vector<128x128xbf16>
        %cst_64 = arith.constant dense<0.000000e+00> : vector<8x128xf32>
        %107 = tpu.matmul %104, %106, %cst_64 {dimension_numbers = #tpu.dot_dimension_numbers<[1], [0], [0], [1], [0, 0, 1, 1], [], []>} : vector<8x128xbf16>, vector<128x128xbf16>, vector<8x128xf32> -> vector<8x128xf32>
        %c4_65 = arith.constant 4 : index
        %c0_66 = arith.constant 0 : index
        %c0_67 = arith.constant 0 : index
        %108 = vector.load %arg8[%c4_65, %c0_66, %c0_67] : memref<5x1x128xf32, #tpu.memory_space<vmem>>, vector<1x1x128xf32>
        %109 = vector.shape_cast %108 : vector<1x1x128xf32> to vector<1x128xf32>
        %110 = vector.broadcast %109 : vector<1x128xf32> to vector<8x128xf32>
        %111 = arith.addf %107, %110 : vector<8x128xf32>
        %cst_68 = arith.constant 5.000000e-01 : f32
        %112 = vector.broadcast %cst_68 : f32 to vector<8x128xf32>
        %113 = arith.mulf %112, %111 : vector<8x128xf32>
        %cst_69 = arith.constant 0.707106769 : f32
        %114 = vector.broadcast %cst_69 : f32 to vector<8x128xf32>
        %115 = arith.mulf %111, %114 : vector<8x128xf32>
        %116 = math.erf %115 : vector<8x128xf32>
        %cst_70 = arith.constant 1.000000e+00 : f32
        %117 = vector.broadcast %cst_70 : f32 to vector<8x128xf32>
        %118 = arith.addf %117, %116 : vector<8x128xf32>
        %119 = arith.mulf %113, %118 : vector<8x128xf32>
        %c0_71 = arith.constant 0 : index
        %c0_72 = arith.constant 0 : index
        %120 = vector.load %arg13[%c0_71, %c0_72] : memref<8x128xf32, #tpu.memory_space<vmem>>, vector<8x128xf32>
        tpu.vector_store %arg13[%c0_71, %c0_72], %119 {strides = array<i32>} : memref<8x128xf32, #tpu.memory_space<vmem>>, vector<8x128xf32>,
      } else {
      }
      %c0 = arith.constant 0 : index
      %c0_7 = arith.constant 0 : index
      %14 = vector.load %arg13[%c0, %c0_7] : memref<8x128xf32, #tpu.memory_space<vmem>>, vector<8x128xf32>
      %15 = arith.truncf %14 : vector<8x128xf32> to vector<8x128xbf16>
      %c0_8 = arith.constant 0 : index
      %c0_9 = arith.constant 0 : index
      %16 = vector.load %arg9[%c0_8, %c0_9] : memref<128x256xbf16, #tpu.memory_space<vmem>>, vector<128x256xbf16>
      %cst = arith.constant dense<0.000000e+00> : vector<8x256xf32>
      %17 = tpu.matmul %15, %16, %cst {dimension_numbers = #tpu.dot_dimension_numbers<[1], [0], [0], [1], [0, 0, 1, 1], [], []>} : vector<8x128xbf16>, vector<128x256xbf16>, vector<8x256xf32> -> vector<8x256xf32>
      %c0_10 = arith.constant 0 : index
      %c0_11 = arith.constant 0 : index
      %18 = vector.load %arg10[%c0_10, %c0_11] : memref<1x256xf32, #tpu.memory_space<vmem>>, vector<1x256xf32>
      %19 = vector.broadcast %18 : vector<1x256xf32> to vector<8x256xf32>
      %20 = arith.addf %17, %19 : vector<8x256xf32>
      %c0_12 = arith.constant 0 : index
      %c0_13 = arith.constant 0 : index
      %21 = vector.load %arg11[%c0_12, %c0_13] : memref<8x256xf32, #tpu.memory_space<vmem>>, vector<8x256xf32>
      tpu.vector_store %arg11[%c0_12, %c0_13], %20 {strides = array<i32>} : memref<8x256xf32, #tpu.memory_space<vmem>>, vector<8x256xf32>,
    } else {
    }
    return
  }
  func.func @transform_0(%arg0: i32, %arg1: i32) -> (i32, i32) {
    %c0_i32 = arith.constant 0 : i32
    %0 = arith.cmpi eq, %arg0, %c0_i32 : i32
    %c0_i32_0 = arith.constant 0 : i32
    %1 = arith.select %0, %arg1, %c0_i32_0 : i32
    %c0_i32_1 = arith.constant 0 : i32
    %c0_i32_2 = arith.constant 0 : i32
    return %c0_i32_1, %1 : i32, i32
  }
  func.func @transform_1(%arg0: i32, %arg1: i32) -> (i32, i32) {
    %c0_i32 = arith.constant 0 : i32
    %0 = arith.cmpi eq, %arg0, %c0_i32 : i32
    %c0_i32_0 = arith.constant 0 : i32
    %1 = arith.select %0, %arg1, %c0_i32_0 : i32
    %c0_i32_1 = arith.constant 0 : i32
    %c0_i32_2 = arith.constant 0 : i32
    return %1, %c0_i32_1 : i32, i32
  }
  func.func @transform_2(%arg0: i32, %arg1: i32) -> (i32, i32) {
    %c0_i32 = arith.constant 0 : i32
    %c0_i32_0 = arith.constant 0 : i32
    %c0_i32_1 = arith.constant 0 : i32
    return %c0_i32, %c0_i32_0 : i32, i32
  }
  func.func @transform_3(%arg0: i32, %arg1: i32) -> (i32, i32) {
    %c0_i32 = arith.constant 0 : i32
    %c0_i32_0 = arith.constant 0 : i32
    %c0_i32_1 = arith.constant 0 : i32
    return %c0_i32, %c0_i32_0 : i32, i32
  }
  func.func @transform_4(%arg0: i32, %arg1: i32) -> (i32, i32) {
    %c0_i32 = arith.constant 0 : i32
    %c0_i32_0 = arith.constant 0 : i32
    %c0_i32_1 = arith.constant 0 : i32
    return %c0_i32, %c0_i32_0 : i32, i32
  }
  func.func @transform_5(%arg0: i32, %arg1: i32) -> (i32, i32, i32) {
    %c0_i32 = arith.constant 0 : i32
    %c0_i32_0 = arith.constant 0 : i32
    %c0_i32_1 = arith.constant 0 : i32
    %c0_i32_2 = arith.constant 0 : i32
    return %c0_i32, %c0_i32_0, %c0_i32_1 : i32, i32, i32
  }
  func.func @transform_6(%arg0: i32, %arg1: i32) -> (i32, i32, i32) {
    %c0_i32 = arith.constant 0 : i32
    %c0_i32_0 = arith.constant 0 : i32
    %c0_i32_1 = arith.constant 0 : i32
    %c0_i32_2 = arith.constant 0 : i32
    return %c0_i32, %c0_i32_0, %c0_i32_1 : i32, i32, i32
  }
  func.func @transform_7(%arg0: i32, %arg1: i32) -> (i32, i32) {
    %c0_i32 = arith.constant 0 : i32
    %c0_i32_0 = arith.constant 0 : i32
    return %c0_i32, %arg0 : i32, i32
  }
  func.func @transform_8(%arg0: i32, %arg1: i32) -> (i32, i32) {
    %c0_i32 = arith.constant 0 : i32
    %c0_i32_0 = arith.constant 0 : i32
    return %c0_i32, %arg0 : i32, i32
  }
  func.func @transform_9(%arg0: i32, %arg1: i32) -> (i32, i32) {
    %c0_i32 = arith.constant 0 : i32
    %c0_i32_0 = arith.constant 0 : i32
    return %c0_i32, %arg0 : i32, i32
  }
}

</mosaic_0001>

<bundles_post_ra>
// kernel: tpu_custom_call.1
= control target key start
LH: loop header
LB: loop body
LE: loop exit
PB: predicated region body
PF: predicated region fallthrough
CT: control target
= control target key end

     0   :  { %s3129_s0 = inlined_call_operand.hbm [shape: bf16[8,768], index: 0, kind: input, shape index: {}]   ;;  %s3130_s1 = inlined_call_operand.hbm [shape: bf16[768,128], index: 1, kind: input, shape index: {}]   ;;  %s3131_s2 = inlined_call_operand.vmem [shape: f32[1,128], index: 2, kind: input, shape index: {}]   ;;  %s3132_s3 = inlined_call_operand.hbm [shape: f32[1,128], index: 3, kind: input, shape index: {}]   ;;  %s3133_s4 = inlined_call_operand.hbm [shape: f32[1,128], index: 4, kind: input, shape index: {}]   ;;  %s3134_s5 = inlined_call_operand.hbm [shape: bf16[5,128,128], index: 5, kind: input, shape index: {}]   ;;  %s3135_s6 = inlined_call_operand.hbm [shape: f32[5,1,128], index: 6, kind: input, shape index: {}]   ;;  %s3136_s7 = inlined_call_operand.hbm [shape: bf16[128,768], index: 7, kind: input, shape index: {}]   ;;  %s3137_s8 = inlined_call_operand.vmem [shape: f32[1,768], index: 8, kind: input, shape index: {}]   ;;  %s3138_s9 = inlined_call_operand.hbm [shape: f32[8,768], index: 9, kind: output, shape index: {}]  }
   0x1   :  { %3156 = sst [smem:[#allocation39_spill]] %s3129_s0 }
   0x2   :  { %3157 = sst [smem:[#allocation40_spill]] %s3131_s2 }
   0x3   :  { %3158 = sst [smem:[#allocation41_spill]] %s3132_s3 }
   0x4   :  { %3159 = sst [smem:[#allocation42_spill]] %s3133_s4 }
   0x5   :  { %3160 = sst [smem:[#allocation43_spill]] %s3134_s5 }
   0x6   :  { %3161 = sst [smem:[#allocation44_spill]] %s3135_s6 }
   0x7   :  { %3162 = sst [smem:[#allocation45_spill]] %s3137_s8 }
   0x8   :  { %3163 = sst [smem:[#allocation46_spill]] %s3138_s9 }
   0x9   :  { %14 = vsyncpa [#allocation5], 0 }
   0xa   :  { %16 = vsyncpa [#allocation5 + $0x1], 0 }
   0xb   :  { %17 = vsyncpa [#allocation8], 0 }
   0xc   :  { %19 = vsyncpa [#allocation8 + $0x1], 0 }
   0xd   :  { %20 = vsyncpa [#allocation11], 0 }
   0xe   :  { %21 = vsyncpa [#allocation14], 0 }
   0xf   :  { %22 = vsyncpa [#allocation6], 0 }
  0x10   :  { %24 = vsyncpa [#allocation6 + $0x1], 0  ;;  %s2748_s30 = smov 0   ;;  %s2750_s10 = smov 0  }
  0x11   :  { %s2752_s11 = smov 0   ;;  %s2754_s12 = smov 0  }
  0x12   :  { %s2756_s13 = smov 0   ;;  %s2758_s14 = smov 0  }
  0x13   :  { %s2760_s15 = smov 0   ;;  %s2762_s16 = smov 0  }
  0x14   :  { %s2764_s17 = smov 0   ;;  %s2766_s18 = smov 0  }
  0x15   :  { %s2768_s19 = smov 0  }
  0x16 LB: > { %3164 = sst [smem:[#allocation24_spill]] %s2644_s30  ;;  %s2804_s20 = sadd.s32 4294967295, %s2684_s19   ;;  %s2684_s19 = sphi %s2768_s19, %s30_s19   ;;  %s2680_s18 = sphi %s2766_s18, %s3226_s18   ;;  %s2676_s17 = sphi %s2764_s17, %s3225_s17   ;;  %s2672_s16 = sphi %s2762_s16, %s3224_s16   ;;  %s2668_s15 = sphi %s2760_s15, %s3219_s15   ;;  %s2664_s14 = sphi %s2758_s14, %s3218_s14   ;;  %s2660_s13 = sphi %s2756_s13, %s3217_s13   ;;  %s2656_s12 = sphi %s2754_s12, %s3216_s12   ;;  %s2652_s11 = sphi %s2752_s11, %s3223_s11   ;;  %s2648_s10 = sphi %s2750_s10, %s3222_s10   ;;  %s2644_s30 = sphi %s2748_s30, %s3214_s30  }
  0x17   : > { %3165 = sst [smem:[#allocation25_spill]] %s2648_s10  ;;  %p1748_p0 = scmp.ge.s32.totalorder %s2684_s19, 1 }
  0x18   : > { %3166 = sst [smem:[#allocation26_spill]] %s2660_s13  ;;  %p67_p1 = scmp.eq.s32.totalorder %s2804_s20, 0 }
  0x19   : > { %3167 = sst [smem:[#allocation27_spill]] %s2664_s14  ;;  %p290_p2 = scmp.lt.s32.totalorder %s2684_s19, 10 }
  0x1a   : > { %3168 = sst [smem:[#allocation28_spill]] %s2668_s15  ;;  %s2686_s25 = smov [#allocation9]  }
  0x1b   : > { %3169 = sst [smem:[#allocation29_spill]] %s2672_s16  ;;  %p2812_p3 = pnand %p1748_p0, %p290_p2 }
  0x1c   : > { %3170 = sst [smem:[#allocation30_spill]] %s2676_s17  ;;  %s307_s26 = sshll.u32 %s2686_s25, 4  ;;  %s308_s26 = int_to_ptr.vmem [resolvable:$true] %s307_s26 }
  0x1d   : > { %s3171_s3 = sld [smem:[#allocation41_spill]]  ;;  %p2175_p4 = pneg %p2812_p3 }
  0x1e   : > { %s3173_s4 = sld [smem:[#allocation42_spill]]  ;;  %s2687_s22 = smov [#allocation10]  }
  0x1f   : > { %p2823_p5 = pnand %p2175_p4, %p67_p1  ;;  %s319_s25 = sshll.u32 %s2687_s22, 4  ;;  %s320_s25 = int_to_ptr.vmem [resolvable:$true] %s319_s25 }
  0x20   : > { %s39_s28 = sadd.s32 1, %s2676_s17  ;;  %p46_p7 = scmp.eq.s32.totalorder %s2680_s18, 0 }
  0x21   : > { %p40_p6 = scmp.ge.s32.totalorder %s39_s28, 3  ;;  %p60_p9 = scmp.ne.s32.totalorder %s2664_s14, %s2660_s13 }
  0x22   : > { %p61_p10 = scmp.eq.s32.totalorder %s2684_s19, 0  ;;  %p66_p11 = scmp.ne.s32.totalorder %s2660_s13, %s2656_s12 }
  0x23   : > { %s305_s23 = sshll.u32 %s3171_s3, 4  ;;  %s42_s3 = sadd.s32 1, %s2680_s18  ;;  %s306_s23 = int_to_ptr.hbm [resolvable:$true] %s305_s23 }
  0x24   : > { %s317_s29 = sshll.u32 %s3173_s4, 4  ;;  %s53_s4 = sadd.s32 1, %s2664_s14  ;;  %s318_s29 = int_to_ptr.hbm [resolvable:$true] %s317_s29 }
  0x25   : > { %2178 = dma.hbm_to_vmem [thread:$0]  (!%p2823_p5), %s306_s23, 16, %s308_s26, [#allocation8]  }
  0x26   : > { %2181 = dma.hbm_to_vmem [thread:$0]  (!%p2823_p5), %s318_s29, 16, %s320_s25, [#allocation11]  }
  0x27   : > { %s3228_s28 = smov (%p40_p6, %s39_s28), 0  ;;  %s3230_s3 = smov (!%p40_p6, %s42_s3), %s2680_s18 }
  0x28   : > { %3175 = sst [smem:[#allocation31_spill]] %s3228_s28  ;;  %p44_p8 = scmp.ge.s32.totalorder %s3230_s3, 3 }
  0x29   : > { %s2840_s23 = scalar_select %p46_p7, %s2676_s17, 0 }
  0x2a   : > { %s3232_s3 = smov (%p44_p8, %s3230_s3), 0  ;;  %p2851_p12 = por %p61_p10, %p60_p9 }
  0x2b   : > { %3176 = sst [smem:[#allocation32_spill]] %s3232_s3  ;;  %p2857_p13 = por %p67_p1, %p66_p11 }
  0x2c   : > { %p48_p0 = scmp.eq.s32.totalorder %s3232_s3, 0  ;;  %s211_s12 = ssub.s32 %s2680_s18, %s3232_s3 }
  0x2d   : > { %s3178_s29 = scalar_select %p2857_p13, 1, 0 }
  0x2e   : > { %p212_p2 = scmp.eq.s32.totalorder %s211_s12, 0  ;;  %s214_s22 = sadd.s32 1, %s2652_s11 }
  0x2f   : > { %3179 = sst [smem:[#allocation33_spill]] %s3178_s29  ;;  %p221_p4 = scmp.ne.s32.totalorder %s2652_s11, %s2648_s10 }
  0x30   : > { %s49_s25 = scalar_select %p48_p0, %s3228_s28, 0 }
  0x31   : > { %s2867_s27 = scalar_select %p212_p2, %s2652_s11, %s214_s22  }
  0x32   : > { %s50_s17 = ssub.s32 %s2840_s23, %s49_s25  ;;  %p227_p7 = scmp.ne.s32.totalorder %s2648_s10, %s2644_s30 }
  0x33   : > { %3180 = sst [smem:[#allocation34_spill]] %s2867_s27  ;;  %p51_p6 = scmp.eq.s32.totalorder %s50_s17, 0 }
  0x34   : > { %p2876_p8 = por %p221_p4, %p61_p10  ;;  %p277_p9 = scmp.eq.s32.totalorder %s2804_s20, 8 }
  0x35   : > { %s2882_s2 = scalar_select %p51_p6, %s2664_s14, %s53_s4  }
  0x36   : > { %p2886_p11 = por %p227_p7, %p67_p1  ;;  %p2890_p0 = por %p277_p9, %p221_p4 }
  0x37   : > { %3182 = sst [smem:[#allocation35_spill]] %s2882_s2  ;;  %s3187_s17 = sadd.s32 4294967294, %s2684_s19  }
  0x38   : > { %s3183_s12 = scalar_select %p2886_p11, 1, 0 }
  0x39   : > { %s3185_s22 = scalar_select %p2890_p0, 1, 0 }
  0x3a   : > { %3184 = sst [smem:[#allocation36_spill]] %s3183_s12  ;;  %p283_p10 = scmp.eq.s32.totalorder %s3187_s17, 8 }
  0x3b   : > { %3186 = sst [smem:[#allocation37_spill]] %s3185_s22  ;;  %p2206_p2 = scmp.lt.s32.totalorder %s2684_s19, 9 }
  0x3c   : > { %s360_s4 = sand.u32 1, %s2664_s14   ;;  %p2899_p6 = por %p283_p10, %p227_p7 }
  0x3d   : > { %s1754_s28 = sshll.u32 %s360_s4, 3  ;;  %s2075_s2 = sshll.u32 %s2840_s23, 3 }
  0x3e   : > { %s3188_s3 = scalar_select %p2899_p6, 1, 0 }
  0x3f   : > { %s3190_s0 = sld [smem:[#allocation39_spill]]  ;;  %s362_s22 = scalar_lea.vmem [#allocation4], %s1754_s28 }
  0x40   : > { %3189 = sst [smem:[#allocation38_spill]] %s3188_s3  ;;  %s373_s16 = sshll.u32 %s362_s22, 4  ;;  %s374_s16 = int_to_ptr.vmem [resolvable:$true] %s373_s16 }
  0x41   : > { %p2911_p4 = pnand %p2206_p2, %p2851_p12  ;;  %s1757_s25 = sshll.u32 %s360_s4, 7 }
  0x42   : > { %p2919_p7 = pnand %p2206_p2, %p2876_p8  ;;  %s384_s30 = scalar_lea.vmem [#allocation7], %s1757_s25 }
  0x43   : > { %s2930_s27 = sshll.u32 %s384_s30, 4  ;;  %s3194_s5 = sld [smem:[#allocation43_spill]]  ;;  %s395_s27 = int_to_ptr.vmem [resolvable:$true] %s2930_s27 }
  0x44   : > { %s2688_s22 = smov [#allocation12]   ;;  %s3195_s6 = sld [smem:[#allocation44_spill]] }
  0x45   : > { %s369_s8 = scalar_lea.hbm %s3190_s0, %s2075_s2  ;;  %s3193_s2 = sand.u32 1, %s2684_s19  }
  0x46   : > { %s371_s15 = sshll.u32 %s369_s8, 4  ;;  %s2925_s8 = scalar_lea.sflag [#allocation5], %s3193_s2  ;;  %s372_s15 = int_to_ptr.hbm [resolvable:$true] %s371_s15 }
  0x47   : > { %2191 = dma.hbm_to_vmem [thread:$0]  (!%p2911_p4), %s372_s15, 128, %s374_s16, %s2925_s8  }
  0x48   : > { %s330_s4 = sshll.u32 %s2688_s22, 4  ;;  %s2689_s2 = smov 64   ;;  %s331_s4 = int_to_ptr.vmem [resolvable:$true] %s330_s4 }
  0x49   : > { %s328_s9 = sshll.u32 %s3194_s5, 4  ;;  %s2690_s0 = smov 4   ;;  %s329_s9 = int_to_ptr.hbm [resolvable:$true] %s328_s9 }
  0x4a   : > { %2184 = dma.hbm_to_vmem [thread:$0]  (!%p2823_p5), %s329_s9, 5120, %s331_s4, [#allocation11], %s2689_s2, %s2689_s2, %s2690_s0  }
  0x4b   : > { %s342_s25 = sshll.u32 %s3195_s6, 4  ;;  %s2691_s30 = smov [#allocation13]   ;;  %s343_s25 = int_to_ptr.hbm [resolvable:$true] %s342_s25 }
  0x4c   : > { %s344_s28 = sshll.u32 %s2691_s30, 4  ;;  %s2076_s26 = sshll.u32 %s2840_s23, 7  ;;  %s345_s28 = int_to_ptr.vmem [resolvable:$true] %s344_s28 }
  0x4d   : > { %s2692_s5 = smov 16   ;;  %s2693_s3 = smov 1  }
  0x4e   : > { %2187 = dma.hbm_to_vmem [thread:$0]  (!%p2823_p5), %s343_s25, 80, %s345_s28, [#allocation14], %s2692_s5, %s2692_s5, %s2693_s3  }
  0x4f   : > { %s391_s10 = scalar_lea.hbm %s3130_s1, %s2076_s26  ;;  %s406_s9 = sand.u32 1, %s2652_s11  }
  0x50   : > { %s392_s4 = sshll.u32 %s391_s10, 4  ;;  %s1760_s15 = sshll.u32 %s406_s9, 7  ;;  %s393_s4 = int_to_ptr.hbm [resolvable:$true] %s392_s4 }
  0x51   : > { %s3196_s16 = sand.u32 1, %s2684_s19   ;;  %s2077_s30 = sshll.u32 %s2680_s18, 3 }
  0x52   : > { %s381_s6 = scalar_lea.sflag [#allocation8], %s3196_s16  ;;  %s408_s23 = scalar_lea.vmem [#allocation15], %s1760_s15 }
  0x53   : > { %2194 = dma.hbm_to_vmem [thread:$0]  (!%p2911_p4), %s393_s4, 2048, %s395_s27, %s381_s6, %s2689_s2, %s2689_s2, %s2690_s0  }
  0x54   : > { %s416_s29 = sshll.u32 %s408_s23, 4  ;;  %s413_s3 = scalar_lea.hbm %s3136_s7, %s2077_s30  ;;  %s417_s29 = int_to_ptr.vmem [resolvable:$true] %s416_s29 }
  0x55   : > { %s414_s5 = sshll.u32 %s413_s3, 4  ;;  %s2694_s12 = smov 384   ;;  %s415_s5 = int_to_ptr.hbm [resolvable:$true] %s414_s5 }
  0x56   : > { %s2695_s25 = smov 128   ;;  %s2696_s28 = smov 8  }
  0x57   : > { %2197 = dma.hbm_to_vmem [thread:$0]  (!%p2919_p7), %s415_s5, 2048, %s417_s29, %s2925_s8, %s2694_s12, %s2695_s25, %s2696_s28  }
  0x58   : > { %436 = sbr.rel (%p2812_p3) target bundleno = 1501 (0x5dd), region = 56  ;;  %s3197_s0 = sld [smem:[#allocation26_spill]] (!%p2812_p3) }
  0x59   : > { %s438_s10 = sand.u32 (!%p2812_p3), 1, %s2804_s20  }
  0x5a   : > { %s439_s13 = scalar_lea.sflag (!%p2812_p3), [#allocation5], %s438_s10 }
  0x5e   : > { %s440_s17 = sand.u32 1, %s3197_s0  }
  0x5f   : > { %s2963_s27 = sshll.u32 %s440_s17, 3 }
  0x60   : > { %s442_s2 = scalar_lea.vmem [#allocation4], %s2963_s27 }
  0x61   : > { %2615 = dma.done.wait (%p2857_p13), %s439_s13, 128  }
  0x62   : > { %2617 = vsyncadd (%p2857_p13), %s439_s13, 4294967168  ;;  %s1765_s14 = sshll.u32 %s440_s17, 7  ;;  %s449_s29 = scalar_lea.sflag [#allocation8], %s438_s10 }
  0x63   : > { %s2970_s24 = scalar_lea.vmem [#allocation7], %s1765_s14 }
  0x64   : > { %2619 = dma.done.wait (%p2857_p13), %s449_s29, 2048  }
  0x65   : > { %2621 = vsyncadd (%p2857_p13), %s449_s29, 4294965248 }
  0x66   : > { %2623 = dma.done.wait (%p67_p1), [#allocation8], 16  }
  0x67   : > { %2625 = vsyncadd (%p67_p1), [#allocation8], 4294967280 }
  0x68   : > { %2627 = dma.done.wait (%p67_p1), [#allocation11], 5136  }
  0x69   : > { %2629 = vsyncadd (%p67_p1), [#allocation11], 4294962160 }
  0x6a   : > { %2631 = dma.done.wait (%p67_p1), [#allocation14], 80  }
  0x6b   : > { %2633 = vsyncadd (%p67_p1), [#allocation14], 4294967216  ;;  %s3199_s8 = sld [smem:[#allocation25_spill]] }
  0x71   : > { %s2989_s22 = sand.u32 1, %s3199_s8  }
  0x72   : > { %s1770_s9 = sshll.u32 %s2989_s22, 7 }
  0x73   : > { %s2992_s4 = scalar_lea.vmem [#allocation15], %s1770_s9 }
  0x74   : > { %2635 = dma.done.wait (%p2886_p11), %s439_s13, 2048  }
  0x75   : > { %2637 = vsyncadd (%p2886_p11), %s439_s13, 4294965248  ;;  %s3201_s15 = sld [smem:[#allocation29_spill]]  ;;  %s1771_s30 = sshll.u32 %s2989_s22, 4 }
  0x76   : > { %s3202_s16 = sld [smem:[#allocation28_spill]]  ;;  %s3008_s12 = scalar_lea.vmem [#allocation16], %s1771_s30 }
  0x77   : > { %s3203_s3 = sld [smem:[#allocation45_spill]] }
  0x7b   : > { %s1772_s20 = sshll.u32 %s3201_s15, 1  ;;  %p545_p3 = scmp.eq.s32.totalorder %s3201_s15, 0 }
  0x7c   : > { %p540_p1 = scmp.lt.s32.totalorder %s1772_s20, 5  ;;  %p546_p5 = scmp.eq.s32.totalorder %s3202_s16, 0 }
  0x7e   : > { %s3234_s20 = smov (!%p540_p1, %s1772_s20), 5  ;;  %p547_p12 = pnand %p546_p5, %p545_p3 }
  0x7f   : > { %s542_s5 = scalar_lea.vmem %s3203_s3, %s3234_s20 }
  0x80   : > { %550 = sbr.rel (%p547_p12) target bundleno = 135 (0x87), region = 88 }
  0x85   : > { %v2697_v0 = vmov 0.0  }
  0x86   : > { %551 = vst [vmem:[#allocation2] sm:$0xff] %v2697_v0 }
  0x87 PF: > { %s3204_s25 = sld [smem:[#allocation29_spill]] }
  0x8d   : > { %p1773_p13 = scmp.ne.s32.totalorder %s3204_s25, 0 }
  0x8f   : > { %554 = sbr.rel (%p1773_p13) target bundleno = 315 (0x13b), region = 92 }
  0x94   : > { %v2085_v1 = vld [vmem:[%s2970_s24 + $0x38] sm:$0xff]  ;;  %v2084_v3 = vld [vmem:[%s2970_s24 + $0x30] sm:$0xff]  ;;  %v2083_v5 = vld [vmem:[%s2970_s24 + $0x28] sm:$0xff] }
  0x95   : > { %v2093_v2 = vld [vmem:[%s2970_s24 + $0x78] sm:$0xff]  ;;  %692 = vmatpush.bf16.msra.mxu0 %v2085_v1  ;;  %v2092_v4 = vld [vmem:[%s2970_s24 + $0x70] sm:$0xff]  ;;  %v2091_v6 = vld [vmem:[%s2970_s24 + $0x68] sm:$0xff] }
  0x96   : > { %705 = vmatpush.bf16.msra.mxu1 %v2093_v2  ;;  %v2082_v7 = vld [vmem:[%s2970_s24 + $0x20] sm:$0xff]  ;;  %v2081_v9 = vld [vmem:[%s2970_s24 + $0x18] sm:$0xff]  ;;  %v2080_v11 = vld [vmem:[%s2970_s24 + $0x10] sm:$0xff] }
  0x97   : > { %v2090_v8 = vld [vmem:[%s2970_s24 + $0x60] sm:$0xff]  ;;  %v2089_v10 = vld [vmem:[%s2970_s24 + $0x58] sm:$0xff]  ;;  %v2088_v12 = vld [vmem:[%s2970_s24 + $0x50] sm:$0xff] }
  0x98   : > { %v2079_v13 = vld [vmem:[%s2970_s24 + $0x8] sm:$0xff]  ;;  %v556_v15 = vld [vmem:[%s442_s2] sm:$0xff]  ;;  %v2078_v18 = vld [vmem:[%s2970_s24] sm:$0xff] }
  0x99   : > { %693 = vmatpush.bf16.msra.mxu0 %v2084_v3  ;;  %v2087_v14 = vld [vmem:[%s2970_s24 + $0x48] sm:$0xff]  ;;  %v590_v16 = vunpack.c.l.b16 %v556_v15  ;;  %v591_v17 = vunpack.c.h.b16 %v556_v15  ;;  %v2086_v19 = vld [vmem:[%s2970_s24 + $0x40] sm:$0xff] }
  0x9a   : > { %706 = vmatpush.bf16.msra.mxu1 %v2092_v4  ;;  %v555_v23 = vld [vmem:[#allocation2] sm:$0xff] }
  0x9b   : > { %v592_v20 = vpack.c.b16 %v590_v16, %v590_v16  ;;  %v593_v21 = vpack.c.b16 %v591_v17, %v591_v17 }
  0x9d   : > { %694 = vmatpush.bf16.msra.mxu0 %v2083_v5 }
  0x9e   : > { %707 = vmatpush.bf16.msra.mxu1 %v2091_v6 }
  0xa1   : > { %695 = vmatpush.bf16.msra.mxu0 %v2082_v7 }
  0xa2   : > { %708 = vmatpush.bf16.msra.mxu1 %v2090_v8 }
  0xa5   : > { %696 = vmatpush.bf16.msra.mxu0 %v2081_v9 }
  0xa6   : > { %709 = vmatpush.bf16.msra.mxu1 %v2089_v10 }
  0xa9   : > { %697 = vmatpush.bf16.msra.mxu0 %v2080_v11 }
  0xaa   : > { %710 = vmatpush.bf16.msra.mxu1 %v2088_v12 }
  0xad   : > { %698 = vmatpush.bf16.msra.mxu0 %v2079_v13 }
  0xae   : > { %711 = vmatpush.bf16.msra.mxu1 %v2087_v14 }
  0xb1   : > { %699 = vmatpush.bf16.msra.mxu0 %v2078_v18 }
  0xb2   : > { %712 = vmatpush.bf16.msra.mxu1 %v2086_v19 }
  0xb4   : > { %700 = vmatmul.bf16.vlgmr.msra.gmra.mxu0 %v592_v20 }
  0xb5   : > { %713 = vmatmul.bf16.vlgmr.msra.gmra.mxu1 %v593_v21 }
 0x131   : > { %v701_v22 = vpop.f32.mrf.mxu0 }
 0x132   : > { %v714_v24 = vpop.f32.mrf.mxu1 }
 0x133   : > { %v715_v25 = vadd.f32 %v714_v24, %v701_v22 }
 0x135   : > { %v718_v26 = vadd.f32 %v715_v25, %v555_v23 }
 0x137   : > { %719 = vst [vmem:[#allocation2] sm:$0xff] %v718_v26 }
 0x139   : > { %v703_v27 = vpop.f32.mrf.mxu0 }
 0x13a   : > { %v716_v28 = vpop.f32.mrf.mxu1 }
 0x13b PF: > { %s3205_s28 = sld [smem:[#allocation28_spill]] }
 0x141   : > { %p1838_p8 = scmp.ne.s32.totalorder %s3205_s28, 2 }
 0x143   : > { %723 = sbr.rel (%p1838_p8) target bundleno = 1480 (0x5c8), region = 96 }
 0x148   : > { %726 = sbr.rel (%p1773_p13) target bundleno = 1311 (0x51f), region = 100  ;;  %s3207_s17 = sld [smem:[#allocation40_spill]] (!%p1773_p13) }
 0x14d   : > { %v2101_v29 = vld [vmem:[#allocation12 + $0x38] sm:$0xff]  ;;  %v2100_v30 = vld [vmem:[#allocation12 + $0x30] sm:$0xff]  ;;  %v2099_v34 = vld [vmem:[#allocation12 + $0x28] sm:$0xff] }
 0x14e   : > { %856 = vmatpush.bf16.msra.mxu0 %v2101_v29  ;;  %v727_v31 = vld [vmem:[#allocation2] sm:$0xff]  ;;  %v2096_v46 = vld [vmem:[#allocation12 + $0x10] sm:$0xff]  ;;  %v2095_v51 = vld [vmem:[#allocation12 + $0x8] sm:$0xff] }
 0x14f   : > { %v2312_v32 = vld [vmem:[%s3207_s17] ss:$0 sm:$0xff]  ;;  %v2098_v37 = vld [vmem:[#allocation12 + $0x20] sm:$0xff]  ;;  %v2314_v16 = vld [vmem:[#allocation10] ss:$0 sm:$0xff] }
 0x150   : > { %v732_v33 = vadd.f32 %v2312_v32, %v727_v31  ;;  %v2097_v41 = vld [vmem:[#allocation12 + $0x18] sm:$0xff]  ;;  %v2094_v55 = vld [vmem:[#allocation12] sm:$0xff]  ;;  %v2108_v21 = vld [vmem:[#allocation12 + $0x70] sm:$0xff] }
 0x151   : > { %v2313_v14 = vld [vmem:[#allocation9] ss:$0 sm:$0xff]  ;;  %v2315_v22 = vld [vmem:[#allocation13] ss:$0 sm:$0xff]  ;;  %v2107_v23 = vld [vmem:[#allocation12 + $0x68] sm:$0xff] }
 0x152   : > { %857 = vmatpush.bf16.msra.mxu0 %v2100_v30  ;;  %v734_v35 = vmul.f32 0.70710677, %v732_v33  ;;  %v733_v11 = vmul.f32 0.5, %v732_v33  ;;  %v2109_v20 = vld [vmem:[#allocation12 + $0x78] sm:$0xff]  ;;  %v2106_v26 = vld [vmem:[#allocation12 + $0x60] sm:$0xff]  ;;  %v2104_v33 = vld [vmem:[#allocation12 + $0x50] sm:$0xff] }
 0x153   : > { %984 = vmatpush.bf16.msra.mxu1 %v2109_v20  ;;  %v2105_v29 = vld [vmem:[#allocation12 + $0x58] sm:$0xff] }
 0x154   : > { %v735_v36 = vmul.f32 %v734_v35, %v734_v35 }
 0x156   : > { %858 = vmatpush.bf16.msra.mxu0 %v2099_v34  ;;  %v736_v38 = vmin.f32 %v735_v36, 16.0 }
 0x157   : > { %985 = vmatpush.bf16.msra.mxu1 %v2108_v21 }
 0x158   : > { %v737_v39 = vmul.f32 2.1237322e-06, %v736_v38  ;;  %v748_v40 = vmul.f32 3.8918573e-05, %v736_v38 }
 0x15a   : > { %859 = vmatpush.bf16.msra.mxu0 %v2098_v37  ;;  %v738_v42 = vadd.f32 0.00028619796, %v737_v39  ;;  %v749_v43 = vadd.f32 0.001143296, %v748_v40 }
 0x15b   : > { %986 = vmatpush.bf16.msra.mxu1 %v2107_v23 }
 0x15c   : > { %v739_v44 = vmul.f32 %v738_v42, %v736_v38  ;;  %v750_v45 = vmul.f32 %v749_v43, %v736_v38  ;;  %v2102_v42 = vld [vmem:[#allocation12 + $0x40] sm:$0xff] }
 0x15e   : > { %860 = vmatpush.bf16.msra.mxu0 %v2097_v41  ;;  %v740_v47 = vadd.f32 0.0036580483, %v739_v44  ;;  %v751_v48 = vadd.f32 0.014752088, %v750_v45 }
 0x15f   : > { %987 = vmatpush.bf16.msra.mxu1 %v2106_v26 }
 0x160   : > { %v741_v49 = vmul.f32 %v740_v47, %v736_v38  ;;  %v752_v50 = vmul.f32 %v751_v48, %v736_v38 }
 0x162   : > { %861 = vmatpush.bf16.msra.mxu0 %v2096_v46  ;;  %v753_v52 = vadd.f32 0.112945676, %v752_v50  ;;  %v742_v53 = vadd.f32 0.05243302, %v741_v49 }
 0x163   : > { %988 = vmatpush.bf16.msra.mxu1 %v2105_v29 }
 0x164   : > { %v754_v54 = vmul.f32 %v753_v52, %v736_v38  ;;  %v743_v57 = vmul.f32 %v742_v53, %v736_v38 }
 0x166   : > { %862 = vmatpush.bf16.msra.mxu0 %v2095_v51  ;;  %v755_v56 = vadd.f32 0.4994258, %v754_v54  ;;  %v744_v60 = vadd.f32 0.18741608, %v743_v57 }
 0x167   : > { %989 = vmatpush.bf16.msra.mxu1 %v2104_v33 }
 0x168   : > { %v756_v58 = vmul.f32 %v755_v56, %v736_v38  ;;  %v745_v61 = vmul.f32 %v744_v60, %v736_v38  ;;  %v2103_v38 = vld [vmem:[#allocation12 + $0x48] sm:$0xff] }
 0x16a   : > { %863 = vmatpush.bf16.msra.mxu0 %v2094_v55  ;;  %v757_v59 = vadd.f32 1.0, %v756_v58  ;;  %v746_v0 = vadd.f32 1.1283791, %v745_v61 }
 0x16b   : > { %990 = vmatpush.bf16.msra.mxu1 %v2103_v38 }
 0x16c   : > { %2320 = vrcp.f32 %v757_v59  ;;  %v769_v1 = vand.u32 2147483648, %v757_v59  ;;  %vm763_vm0 = vweird.f32 %v757_v59  ;;  %v767_v3 = vand.u32 2147483647, %v757_v59 }
 0x16d   : > { %v747_v6 = vmul.f32 %v746_v0, %v734_v35 }
 0x16e   : > { %v770_v5 = vor.u32 1.1754944e-38, %v769_v1  ;;  %vm768_vm3 = vcmp.eq.f32.partialorder %v767_v3, 8.507059e+37 }
 0x16f   : > { %991 = vmatpush.bf16.msra.mxu1 %v2102_v42 }
 0x172   : > { %v2321_v62 = vpop.eup %2320 }
 0x173   : > { %v759_v63 = vmul.f32 %v2321_v62, %v757_v59  ;;  %vm764_vm1 = vweird.f32 %v2321_v62 }
 0x174   : > { %vm765_vm2 = vmor %vm763_vm0, %vm764_vm1 }
 0x175   : > { %v760_v2 = vsub.f32 1.0, %v759_v63 }
 0x177   : > { %v761_v4 = vmul.f32 %v2321_v62, %v760_v2 }
 0x179   : > { %v762_v7 = vadd.f32 %v2321_v62, %v761_v4 }
 0x17b   : > { %v766_v8 = vsel %vm765_vm2, %v2321_v62, %v762_v7 }
 0x17c   : > { %v771_v9 = vsel %vm768_vm3, %v770_v5, %v766_v8  ;;  %v2117_v8 = vld [vmem:[#allocation12 + $0xb8] sm:$0xff] }
 0x17d   : > { %v772_v10 = vmul.f32 %v771_v9, %v747_v6  ;;  %1112 = vmatpush.bf16.msra.mxu2 %v2117_v8  ;;  %v2116_v9 = vld [vmem:[#allocation12 + $0xb0] sm:$0xff] }
 0x17f   : > { %v1840_v12 = vclamps-f32 %v772_v10, 1.0  ;;  %v2316_v10 = vld [vmem:[#allocation13 + $0x1] ss:$0 sm:$0xff] }
 0x181   : > { %v775_v13 = vadd.f32 1.0, %v1840_v12  ;;  %1113 = vmatpush.bf16.msra.mxu2 %v2116_v9 }
 0x183   : > { %v776_v15 = vmul.f32 %v775_v13, %v733_v11  ;;  %v2115_v11 = vld [vmem:[#allocation12 + $0xa8] sm:$0xff] }
 0x185   : > { %v781_v17 = vmul.f32 %v2313_v14, %v776_v15  ;;  %1114 = vmatpush.bf16.msra.mxu2 %v2115_v11  ;;  %v2114_v14 = vld [vmem:[#allocation12 + $0xa0] sm:$0xff] }
 0x187   : > { %v786_v18 = vadd.f32 %v2314_v16, %v781_v17  ;;  %v2113_v17 = vld [vmem:[#allocation12 + $0x98] sm:$0xff] }
 0x189   : > { %v787_v19 = vpack.c.bf16 %v786_v18, %v786_v18  ;;  %1115 = vmatpush.bf16.msra.mxu2 %v2114_v14 }
 0x18b   : > { %864 = vmatmul.bf16.vlgmr.msra.gmra.mxu0 %v787_v19 }
 0x18d   : > { %1116 = vmatpush.bf16.msra.mxu2 %v2113_v17 }
 0x208   : > { %v865_v24 = vpop.f32.mrf.mxu0 }
 0x209   : > { %v866_v25 = vadd.f32 %v2315_v22, %v865_v24  ;;  %v2112_v22 = vld [vmem:[#allocation12 + $0x90] sm:$0xff] }
 0x20a   : > { %1117 = vmatpush.bf16.msra.mxu2 %v2112_v22 }
 0x20b   : > { %v870_v27 = vmul.f32 0.70710677, %v866_v25  ;;  %v869_v4 = vmul.f32 0.5, %v866_v25 }
 0x20d   : > { %v871_v28 = vmul.f32 %v870_v27, %v870_v27 }
 0x20f   : > { %v872_v30 = vmin.f32 %v871_v28, 16.0 }
 0x210   : > { %v867_v31 = vpop.f32.mrf.mxu0 }
 0x211   : > { %v873_v32 = vmul.f32 2.1237322e-06, %v872_v30  ;;  %v884_v34 = vmul.f32 3.8918573e-05, %v872_v30  ;;  %v2110_v31 = vld [vmem:[#allocation12 + $0x80] sm:$0xff] }
 0x213   : > { %v874_v35 = vadd.f32 0.00028619796, %v873_v32  ;;  %v885_v36 = vadd.f32 0.001143296, %v884_v34 }
 0x215   : > { %v875_v37 = vmul.f32 %v874_v35, %v872_v30  ;;  %v886_v39 = vmul.f32 %v885_v36, %v872_v30 }
 0x217   : > { %v887_v40 = vadd.f32 0.014752088, %v886_v39  ;;  %v876_v41 = vadd.f32 0.0036580483, %v875_v37 }
 0x219   : > { %v888_v43 = vmul.f32 %v887_v40, %v872_v30  ;;  %v877_v45 = vmul.f32 %v876_v41, %v872_v30 }
 0x21b   : > { %v889_v44 = vadd.f32 0.112945676, %v888_v43  ;;  %v878_v48 = vadd.f32 0.05243302, %v877_v45 }
 0x21d   : > { %v890_v46 = vmul.f32 %v889_v44, %v872_v30  ;;  %v879_v51 = vmul.f32 %v878_v48, %v872_v30 }
 0x21f   : > { %v891_v47 = vadd.f32 0.4994258, %v890_v46  ;;  %v880_v52 = vadd.f32 0.18741608, %v879_v51 }
 0x221   : > { %v892_v49 = vmul.f32 %v891_v47, %v872_v30  ;;  %v881_v54 = vmul.f32 %v880_v52, %v872_v30 }
 0x223   : > { %v893_v50 = vadd.f32 1.0, %v892_v49  ;;  %v882_v58 = vadd.f32 1.1283791, %v881_v54 }
 0x225   : > { %2322 = vrcp.f32 %v893_v50  ;;  %v905_v57 = vand.u32 2147483648, %v893_v50  ;;  %v903_v60 = vand.u32 2147483647, %v893_v50  ;;  %vm899_vm5 = vweird.f32 %v893_v50 }
 0x226   : > { %v883_v63 = vmul.f32 %v882_v58, %v870_v27  ;;  %v2111_v27 = vld [vmem:[#allocation12 + $0x88] sm:$0xff] }
 0x227   : > { %v906_v62 = vor.u32 1.1754944e-38, %v905_v57  ;;  %vm904_vm7 = vcmp.eq.f32.partialorder %v903_v60, 8.507059e+37  ;;  %1118 = vmatpush.bf16.msra.mxu2 %v2111_v27  ;;  %v2125_v60 = vld [vmem:[#allocation12 + $0xf8] sm:$0xff] }
 0x228   : > { %1240 = vmatpush.bf16.msra.mxu3 %v2125_v60 }
 0x22b   : > { %v2323_v53 = vpop.eup %2322  ;;  %1119 = vmatpush.bf16.msra.mxu2 %v2110_v31 }
 0x22c   : > { %v895_v55 = vmul.f32 %v2323_v53, %v893_v50  ;;  %vm900_vm4 = vweird.f32 %v2323_v53 }
 0x22d   : > { %vm901_vm6 = vmor %vm899_vm5, %vm900_vm4 }
 0x22e   : > { %v896_v56 = vsub.f32 1.0, %v895_v55 }
 0x230   : > { %v897_v59 = vmul.f32 %v2323_v53, %v896_v56 }
 0x232   : > { %v898_v61 = vadd.f32 %v2323_v53, %v897_v59 }
 0x234   : > { %v902_v0 = vsel %vm901_vm6, %v2323_v53, %v898_v61  ;;  %v2124_v61 = vld [vmem:[#allocation12 + $0xf0] sm:$0xff] }
 0x235   : > { %v907_v1 = vsel %vm904_vm7, %v906_v62, %v902_v0  ;;  %v2317_v62 = vld [vmem:[#allocation13 + $0x2] ss:$0 sm:$0xff]  ;;  %1241 = vmatpush.bf16.msra.mxu3 %v2124_v61 }
 0x236   : > { %v908_v2 = vmul.f32 %v907_v1, %v883_v63  ;;  %v2123_v63 = vld [vmem:[#allocation12 + $0xe8] sm:$0xff] }
 0x238   : > { %v1873_v3 = vclamps-f32 %v908_v2, 1.0  ;;  %v2122_v2 = vld [vmem:[#allocation12 + $0xe0] sm:$0xff] }
 0x239   : > { %1242 = vmatpush.bf16.msra.mxu3 %v2123_v63 }
 0x23a   : > { %v911_v5 = vadd.f32 1.0, %v1873_v3 }
 0x23c   : > { %v912_v6 = vmul.f32 %v911_v5, %v869_v4  ;;  %v2121_v5 = vld [vmem:[#allocation12 + $0xd8] sm:$0xff] }
 0x23d   : > { %1243 = vmatpush.bf16.msra.mxu3 %v2122_v2 }
 0x23e   : > { %v913_v7 = vpack.c.bf16 %v912_v6, %v912_v6 }
 0x240   : > { %992 = vmatmul.bf16.vlgmr.msra.gmra.mxu1 %v913_v7 }
 0x241   : > { %1244 = vmatpush.bf16.msra.mxu3 %v2121_v5 }
 0x2bd   : > { %v993_v12 = vpop.f32.mrf.mxu1 }
 0x2be   : > { %v994_v13 = vadd.f32 %v2316_v10, %v993_v12  ;;  %v2120_v10 = vld [vmem:[#allocation12 + $0xd0] sm:$0xff] }
 0x2bf   : > { %1245 = vmatpush.bf16.msra.mxu3 %v2120_v10 }
 0x2c0   : > { %v998_v15 = vmul.f32 0.70710677, %v994_v13  ;;  %v997_v56 = vmul.f32 0.5, %v994_v13 }
 0x2c2   : > { %v999_v16 = vmul.f32 %v998_v15, %v998_v15 }
 0x2c4   : > { %v1000_v18 = vmin.f32 %v999_v16, 16.0 }
 0x2c5   : > { %v995_v19 = vpop.f32.mrf.mxu1 }
 0x2c6   : > { %v1001_v20 = vmul.f32 2.1237322e-06, %v1000_v18  ;;  %v1012_v21 = vmul.f32 3.8918573e-05, %v1000_v18  ;;  %v2118_v19 = vld [vmem:[#allocation12 + $0xc0] sm:$0xff] }
 0x2c8   : > { %v1002_v23 = vadd.f32 0.00028619796, %v1001_v20  ;;  %v1013_v24 = vadd.f32 0.001143296, %v1012_v21 }
 0x2ca   : > { %v1003_v25 = vmul.f32 %v1002_v23, %v1000_v18  ;;  %v1014_v26 = vmul.f32 %v1013_v24, %v1000_v18 }
 0x2cc   : > { %v1015_v28 = vadd.f32 0.014752088, %v1014_v26  ;;  %v1004_v29 = vadd.f32 0.0036580483, %v1003_v25 }
 0x2ce   : > { %v1016_v30 = vmul.f32 %v1015_v28, %v1000_v18  ;;  %v1005_v33 = vmul.f32 %v1004_v29, %v1000_v18 }
 0x2d0   : > { %v1017_v32 = vadd.f32 0.112945676, %v1016_v30  ;;  %v1006_v36 = vadd.f32 0.05243302, %v1005_v33 }
 0x2d2   : > { %v1018_v34 = vmul.f32 %v1017_v32, %v1000_v18  ;;  %v1007_v39 = vmul.f32 %v1006_v36, %v1000_v18 }
 0x2d4   : > { %v1019_v35 = vadd.f32 0.4994258, %v1018_v34  ;;  %v1008_v40 = vadd.f32 0.18741608, %v1007_v39 }
 0x2d6   : > { %v1020_v37 = vmul.f32 %v1019_v35, %v1000_v18  ;;  %v1009_v42 = vmul.f32 %v1008_v40, %v1000_v18 }
 0x2d8   : > { %v1021_v38 = vadd.f32 1.0, %v1020_v37  ;;  %v1010_v46 = vadd.f32 1.1283791, %v1009_v42 }
 0x2da   : > { %2324 = vrcp.f32 %v1021_v38  ;;  %v1033_v45 = vand.u32 2147483648, %v1021_v38  ;;  %v1031_v48 = vand.u32 2147483647, %v1021_v38  ;;  %vm1027_vm9 = vweird.f32 %v1021_v38 }
 0x2db   : > { %v1011_v51 = vmul.f32 %v1010_v46, %v998_v15  ;;  %v2119_v15 = vld [vmem:[#allocation12 + $0xc8] sm:$0xff] }
 0x2dc   : > { %v1034_v50 = vor.u32 1.1754944e-38, %v1033_v45  ;;  %vm1032_vm11 = vcmp.eq.f32.partialorder %v1031_v48, 8.507059e+37  ;;  %1246 = vmatpush.bf16.msra.mxu3 %v2119_v15  ;;  %v2133_v48 = vld [vmem:[#allocation12 + $0x138] sm:$0xff] }
 0x2dd   : > { %1368 = vmatpush.bf16.msrb.mxu0 %v2133_v48 }
 0x2e0   : > { %v2325_v41 = vpop.eup %2324  ;;  %1247 = vmatpush.bf16.msra.mxu3 %v2118_v19 }
 0x2e1   : > { %v1023_v43 = vmul.f32 %v2325_v41, %v1021_v38  ;;  %vm1028_vm8 = vweird.f32 %v2325_v41 }
 0x2e2   : > { %vm1029_vm10 = vmor %vm1027_vm9, %vm1028_vm8 }
 0x2e3   : > { %v1024_v44 = vsub.f32 1.0, %v1023_v43 }
 0x2e5   : > { %v1025_v47 = vmul.f32 %v2325_v41, %v1024_v44 }
 0x2e7   : > { %v1026_v49 = vadd.f32 %v2325_v41, %v1025_v47 }
 0x2e9   : > { %v1030_v52 = vsel %vm1029_vm10, %v2325_v41, %v1026_v49  ;;  %v2132_v49 = vld [vmem:[#allocation12 + $0x130] sm:$0xff] }
 0x2ea   : > { %v1035_v53 = vsel %vm1032_vm11, %v1034_v50, %v1030_v52  ;;  %v2318_v50 = vld [vmem:[#allocation13 + $0x3] ss:$0 sm:$0xff]  ;;  %1369 = vmatpush.bf16.msrb.mxu0 %v2132_v49  ;;  %v2131_v52 = vld [vmem:[#allocation12 + $0x128] sm:$0xff] }
 0x2eb   : > { %v1036_v54 = vmul.f32 %v1035_v53, %v1011_v51 }
 0x2ed   : > { %v1906_v55 = vclamps-f32 %v1036_v54, 1.0 }
 0x2ee   : > { %1370 = vmatpush.bf16.msrb.mxu0 %v2131_v52 }
 0x2ef   : > { %v1039_v57 = vadd.f32 1.0, %v1906_v55  ;;  %v2130_v55 = vld [vmem:[#allocation12 + $0x120] sm:$0xff] }
 0x2f1   : > { %v1040_v58 = vmul.f32 %v1039_v57, %v997_v56 }
 0x2f2   : > { %1371 = vmatpush.bf16.msrb.mxu0 %v2130_v55 }
 0x2f3   : > { %v1041_v59 = vpack.c.bf16 %v1040_v58, %v1040_v58 }
 0x2f5   : > { %1120 = vmatmul.bf16.vlgmr.msra.gmra.mxu2 %v1041_v59  ;;  %v2129_v59 = vld [vmem:[#allocation12 + $0x118] sm:$0xff] }
 0x2f6   : > { %1372 = vmatpush.bf16.msrb.mxu0 %v2129_v59 }
 0x378   : > { %v1121_v0 = vpop.f32.mrf.mxu2 }
 0x379   : > { %v1122_v1 = vadd.f32 %v2317_v62, %v1121_v0  ;;  %v2128_v0 = vld [vmem:[#allocation12 + $0x110] sm:$0xff] }
 0x37a   : > { %1373 = vmatpush.bf16.msrb.mxu0 %v2128_v0 }
 0x37b   : > { %v1126_v3 = vmul.f32 0.70710677, %v1122_v1  ;;  %v1125_v44 = vmul.f32 0.5, %v1122_v1 }
 0x37d   : > { %v1127_v4 = vmul.f32 %v1126_v3, %v1126_v3 }
 0x37f   : > { %v1128_v6 = vmin.f32 %v1127_v4, 16.0 }
 0x380   : > { %v1123_v7 = vpop.f32.mrf.mxu2 }
 0x381   : > { %v1129_v8 = vmul.f32 2.1237322e-06, %v1128_v6  ;;  %v1140_v9 = vmul.f32 3.8918573e-05, %v1128_v6  ;;  %v2126_v7 = vld [vmem:[#allocation12 + $0x100] sm:$0xff] }
 0x383   : > { %v1130_v11 = vadd.f32 0.00028619796, %v1129_v8  ;;  %v1141_v12 = vadd.f32 0.001143296, %v1140_v9 }
 0x385   : > { %v1131_v13 = vmul.f32 %v1130_v11, %v1128_v6  ;;  %v1142_v14 = vmul.f32 %v1141_v12, %v1128_v6 }
 0x387   : > { %v1143_v16 = vadd.f32 0.014752088, %v1142_v14  ;;  %v1132_v17 = vadd.f32 0.0036580483, %v1131_v13 }
 0x389   : > { %v1144_v18 = vmul.f32 %v1143_v16, %v1128_v6  ;;  %v1133_v21 = vmul.f32 %v1132_v17, %v1128_v6 }
 0x38b   : > { %v1145_v20 = vadd.f32 0.112945676, %v1144_v18  ;;  %v1134_v24 = vadd.f32 0.05243302, %v1133_v21 }
 0x38d   : > { %v1146_v22 = vmul.f32 %v1145_v20, %v1128_v6  ;;  %v1135_v27 = vmul.f32 %v1134_v24, %v1128_v6 }
 0x38f   : > { %v1147_v23 = vadd.f32 0.4994258, %v1146_v22  ;;  %v1136_v28 = vadd.f32 0.18741608, %v1135_v27 }
 0x391   : > { %v1148_v25 = vmul.f32 %v1147_v23, %v1128_v6  ;;  %v1137_v30 = vmul.f32 %v1136_v28, %v1128_v6 }
 0x393   : > { %v1149_v26 = vadd.f32 1.0, %v1148_v25  ;;  %v1138_v34 = vadd.f32 1.1283791, %v1137_v30 }
 0x395   : > { %2326 = vrcp.f32 %v1149_v26  ;;  %v1161_v33 = vand.u32 2147483648, %v1149_v26  ;;  %v1159_v36 = vand.u32 2147483647, %v1149_v26  ;;  %vm1155_vm13 = vweird.f32 %v1149_v26 }
 0x396   : > { %v1139_v39 = vmul.f32 %v1138_v34, %v1126_v3  ;;  %v2127_v3 = vld [vmem:[#allocation12 + $0x108] sm:$0xff] }
 0x397   : > { %v1162_v38 = vor.u32 1.1754944e-38, %v1161_v33  ;;  %vm1160_vm15 = vcmp.eq.f32.partialorder %v1159_v36, 8.507059e+37  ;;  %1374 = vmatpush.bf16.msrb.mxu0 %v2127_v3  ;;  %v2319_v36 = vld [vmem:[#allocation13 + $0x4] ss:$0 sm:$0xff] }
 0x39b   : > { %v2327_v29 = vpop.eup %2326  ;;  %1375 = vmatpush.bf16.msrb.mxu0 %v2126_v7 }
 0x39c   : > { %v1151_v31 = vmul.f32 %v2327_v29, %v1149_v26  ;;  %vm1156_vm12 = vweird.f32 %v2327_v29 }
 0x39d   : > { %vm1157_vm14 = vmor %vm1155_vm13, %vm1156_vm12 }
 0x39e   : > { %v1152_v32 = vsub.f32 1.0, %v1151_v31 }
 0x3a0   : > { %v1153_v35 = vmul.f32 %v2327_v29, %v1152_v32 }
 0x3a2   : > { %v1154_v37 = vadd.f32 %v2327_v29, %v1153_v35 }
 0x3a4   : > { %v1158_v40 = vsel %vm1157_vm14, %v2327_v29, %v1154_v37 }
 0x3a5   : > { %v1163_v41 = vsel %vm1160_vm15, %v1162_v38, %v1158_v40 }
 0x3a6   : > { %v1164_v42 = vmul.f32 %v1163_v41, %v1139_v39 }
 0x3a8   : > { %v1939_v43 = vclamps-f32 %v1164_v42, 1.0 }
 0x3aa   : > { %v1167_v45 = vadd.f32 1.0, %v1939_v43 }
 0x3ac   : > { %v1168_v46 = vmul.f32 %v1167_v45, %v1125_v44 }
 0x3ae   : > { %v1169_v47 = vpack.c.bf16 %v1168_v46, %v1168_v46 }
 0x3b0   : > { %1248 = vmatmul.bf16.vlgmr.msra.gmra.mxu3 %v1169_v47 }
 0x433   : > { %v1249_v51 = vpop.f32.mrf.mxu3 }
 0x434   : > { %v1250_v53 = vadd.f32 %v2318_v50, %v1249_v51 }
 0x436   : > { %v1254_v54 = vmul.f32 0.70710677, %v1250_v53  ;;  %v1253_v32 = vmul.f32 0.5, %v1250_v53 }
 0x438   : > { %v1255_v56 = vmul.f32 %v1254_v54, %v1254_v54 }
 0x43a   : > { %v1256_v57 = vmin.f32 %v1255_v56, 16.0 }
 0x43b   : > { %v1251_v58 = vpop.f32.mrf.mxu3 }
 0x43c   : > { %v1257_v60 = vmul.f32 2.1237322e-06, %v1256_v57  ;;  %v1268_v61 = vmul.f32 3.8918573e-05, %v1256_v57 }
 0x43e   : > { %v1258_v62 = vadd.f32 0.00028619796, %v1257_v60  ;;  %v1269_v63 = vadd.f32 0.001143296, %v1268_v61 }
 0x440   : > { %v1259_v1 = vmul.f32 %v1258_v62, %v1256_v57  ;;  %v1270_v2 = vmul.f32 %v1269_v63, %v1256_v57 }
 0x442   : > { %v1271_v4 = vadd.f32 0.014752088, %v1270_v2  ;;  %v1260_v5 = vadd.f32 0.0036580483, %v1259_v1 }
 0x444   : > { %v1272_v6 = vmul.f32 %v1271_v4, %v1256_v57  ;;  %v1261_v9 = vmul.f32 %v1260_v5, %v1256_v57 }
 0x446   : > { %v1273_v8 = vadd.f32 0.112945676, %v1272_v6  ;;  %v1262_v12 = vadd.f32 0.05243302, %v1261_v9 }
 0x448   : > { %v1274_v10 = vmul.f32 %v1273_v8, %v1256_v57  ;;  %v1263_v15 = vmul.f32 %v1262_v12, %v1256_v57 }
 0x44a   : > { %v1275_v11 = vadd.f32 0.4994258, %v1274_v10  ;;  %v1264_v16 = vadd.f32 0.18741608, %v1263_v15 }
 0x44c   : > { %v1276_v13 = vmul.f32 %v1275_v11, %v1256_v57  ;;  %v1265_v18 = vmul.f32 %v1264_v16, %v1256_v57 }
 0x44e   : > { %v1277_v14 = vadd.f32 1.0, %v1276_v13  ;;  %v1266_v22 = vadd.f32 1.1283791, %v1265_v18 }
 0x450   : > { %2328 = vrcp.f32 %v1277_v14  ;;  %v1289_v21 = vand.u32 2147483648, %v1277_v14  ;;  %v1287_v24 = vand.u32 2147483647, %v1277_v14  ;;  %vm1283_vm1 = vweird.f32 %v1277_v14 }
 0x451   : > { %v1267_v27 = vmul.f32 %v1266_v22, %v1254_v54 }
 0x452   : > { %v1290_v26 = vor.u32 1.1754944e-38, %v1289_v21  ;;  %vm1288_vm3 = vcmp.eq.f32.partialorder %v1287_v24, 8.507059e+37 }
 0x456   : > { %v2329_v17 = vpop.eup %2328 }
 0x457   : > { %v1279_v19 = vmul.f32 %v2329_v17, %v1277_v14  ;;  %vm1284_vm0 = vweird.f32 %v2329_v17 }
 0x458   : > { %vm1285_vm2 = vmor %vm1283_vm1, %vm1284_vm0 }
 0x459   : > { %v1280_v20 = vsub.f32 1.0, %v1279_v19 }
 0x45b   : > { %v1281_v23 = vmul.f32 %v2329_v17, %v1280_v20 }
 0x45d   : > { %v1282_v25 = vadd.f32 %v2329_v17, %v1281_v23 }
 0x45f   : > { %v1286_v28 = vsel %vm1285_vm2, %v2329_v17, %v1282_v25 }
 0x460   : > { %v1291_v29 = vsel %vm1288_vm3, %v1290_v26, %v1286_v28 }
 0x461   : > { %v1292_v30 = vmul.f32 %v1291_v29, %v1267_v27 }
 0x463   : > { %v1972_v31 = vclamps-f32 %v1292_v30, 1.0 }
 0x465   : > { %v1295_v33 = vadd.f32 1.0, %v1972_v31 }
 0x467   : > { %v1296_v34 = vmul.f32 %v1295_v33, %v1253_v32 }
 0x469   : > { %v1297_v35 = vpack.c.bf16 %v1296_v34, %v1296_v34 }
 0x46b   : > { %1376 = vmatmul.bf16.vlgmr.msrb.gmra.mxu0 %v1297_v35 }
 0x4e8   : > { %v1377_v37 = vpop.f32.mrf.mxu0 }
 0x4e9   : > { %v1378_v38 = vadd.f32 %v2319_v36, %v1377_v37 }
 0x4eb   : > { %v1382_v39 = vmul.f32 0.70710677, %v1378_v38  ;;  %v1381_v12 = vmul.f32 0.5, %v1378_v38 }
 0x4ed   : > { %v1383_v40 = vmul.f32 %v1382_v39, %v1382_v39 }
 0x4ef   : > { %v1384_v41 = vmin.f32 %v1383_v40, 16.0 }
 0x4f0   : > { %v1379_v42 = vpop.f32.mrf.mxu0 }
 0x4f1   : > { %v1385_v43 = vmul.f32 2.1237322e-06, %v1384_v41  ;;  %v1396_v44 = vmul.f32 3.8918573e-05, %v1384_v41 }
 0x4f3   : > { %v1386_v45 = vadd.f32 0.00028619796, %v1385_v43  ;;  %v1397_v46 = vadd.f32 0.001143296, %v1396_v44 }
 0x4f5   : > { %v1387_v47 = vmul.f32 %v1386_v45, %v1384_v41  ;;  %v1398_v48 = vmul.f32 %v1397_v46, %v1384_v41 }
 0x4f7   : > { %v1399_v49 = vadd.f32 0.014752088, %v1398_v48  ;;  %v1388_v50 = vadd.f32 0.0036580483, %v1387_v47 }
 0x4f9   : > { %v1400_v51 = vmul.f32 %v1399_v49, %v1384_v41  ;;  %v1389_v53 = vmul.f32 %v1388_v50, %v1384_v41 }
 0x4fb   : > { %v1401_v52 = vadd.f32 0.112945676, %v1400_v51  ;;  %v1390_v56 = vadd.f32 0.05243302, %v1389_v53 }
 0x4fd   : > { %v1402_v54 = vmul.f32 %v1401_v52, %v1384_v41  ;;  %v1391_v59 = vmul.f32 %v1390_v56, %v1384_v41 }
 0x4ff   : > { %v1403_v55 = vadd.f32 0.4994258, %v1402_v54  ;;  %v1392_v60 = vadd.f32 0.18741608, %v1391_v59 }
 0x501   : > { %v1404_v57 = vmul.f32 %v1403_v55, %v1384_v41  ;;  %v1393_v62 = vmul.f32 %v1392_v60, %v1384_v41 }
 0x503   : > { %v1405_v58 = vadd.f32 1.0, %v1404_v57  ;;  %v1394_v2 = vadd.f32 1.1283791, %v1393_v62 }
 0x505   : > { %2330 = vrcp.f32 %v1405_v58  ;;  %v1417_v1 = vand.u32 2147483648, %v1405_v58  ;;  %v1415_v4 = vand.u32 2147483647, %v1405_v58  ;;  %vm1411_vm5 = vweird.f32 %v1405_v58 }
 0x506   : > { %v1395_v7 = vmul.f32 %v1394_v2, %v1382_v39 }
 0x507   : > { %v1418_v6 = vor.u32 1.1754944e-38, %v1417_v1  ;;  %vm1416_vm7 = vcmp.eq.f32.partialorder %v1415_v4, 8.507059e+37 }
 0x50b   : > { %v2331_v61 = vpop.eup %2330 }
 0x50c   : > { %v1407_v63 = vmul.f32 %v2331_v61, %v1405_v58  ;;  %vm1412_vm4 = vweird.f32 %v2331_v61 }
 0x50d   : > { %vm1413_vm6 = vmor %vm1411_vm5, %vm1412_vm4 }
 0x50e   : > { %v1408_v0 = vsub.f32 1.0, %v1407_v63 }
 0x510   : > { %v1409_v3 = vmul.f32 %v2331_v61, %v1408_v0 }
 0x512   : > { %v1410_v5 = vadd.f32 %v2331_v61, %v1409_v3 }
 0x514   : > { %v1414_v8 = vsel %vm1413_vm6, %v2331_v61, %v1410_v5 }
 0x515   : > { %v1419_v9 = vsel %vm1416_vm7, %v1418_v6, %v1414_v8 }
 0x516   : > { %v1420_v10 = vmul.f32 %v1419_v9, %v1395_v7 }
 0x518   : > { %v2005_v11 = vclamps-f32 %v1420_v10, 1.0 }
 0x51a   : > { %v1423_v13 = vadd.f32 1.0, %v2005_v11 }
 0x51c   : > { %v1424_v14 = vmul.f32 %v1423_v13, %v1381_v12 }
 0x51e   : > { %1425 = vst [vmem:[#allocation3] sm:$0xff] %v1424_v14 }
 0x51f PF: > { %v2064_v15 = vld [vmem:[%s2992_s4 + $0x70] sm:$0xf]  ;;  %v2149_v16 = vld [vmem:[%s2992_s4 + $0x74] sm:$0xf0]  ;;  %v2148_v17 = vld [vmem:[%s2992_s4 + $0x74] sm:$0xf] }
 0x520   : > { %v2065_v18 = vor.u32 %v2149_v16, %v2064_v15  ;;  %v2066_v19 = vld [vmem:[%s2992_s4 + $0x78] sm:$0xf0]  ;;  %v2056_v20 = vld [vmem:[%s2992_s4 + $0x60] sm:$0xf]  ;;  %v2147_v21 = vld [vmem:[%s2992_s4 + $0x64] sm:$0xf0] }
 0x521   : > { %v2069_v22 = vor.u32 %v2148_v17, %v2066_v19  ;;  %v2146_v23 = vld [vmem:[%s2992_s4 + $0x64] sm:$0xf]  ;;  %v2058_v24 = vld [vmem:[%s2992_s4 + $0x68] sm:$0xf0]  ;;  %v2057_v25 = vor.u32 %v2147_v21, %v2056_v20  ;;  %v2048_v27 = vld [vmem:[%s2992_s4 + $0x50] sm:$0xf] }
 0x522   : > { %1530 = vmatpush.bf16.msra.mxu0 %v2065_v18  ;;  %v2061_v26 = vor.u32 %v2146_v23, %v2058_v24  ;;  %v2145_v28 = vld [vmem:[%s2992_s4 + $0x54] sm:$0xf0]  ;;  %v2144_v29 = vld [vmem:[%s2992_s4 + $0x54] sm:$0xf]  ;;  %v2050_v30 = vld [vmem:[%s2992_s4 + $0x58] sm:$0xf0] }
 0x523   : > { %1543 = vmatpush.bf16.msra.mxu1 %v2069_v22  ;;  %v2049_v31 = vor.u32 %v2145_v28, %v2048_v27  ;;  %v2053_v32 = vor.u32 %v2144_v29, %v2050_v30  ;;  %v2040_v33 = vld [vmem:[%s2992_s4 + $0x40] sm:$0xf]  ;;  %v2143_v34 = vld [vmem:[%s2992_s4 + $0x44] sm:$0xf0]  ;;  %v2142_v35 = vld [vmem:[%s2992_s4 + $0x44] sm:$0xf] }
 0x524   : > { %v2042_v36 = vld [vmem:[%s2992_s4 + $0x48] sm:$0xf0]  ;;  %v2041_v37 = vor.u32 %v2143_v34, %v2040_v33  ;;  %v2032_v39 = vld [vmem:[%s2992_s4 + $0x30] sm:$0xf]  ;;  %v2141_v40 = vld [vmem:[%s2992_s4 + $0x34] sm:$0xf0] }
 0x525   : > { %v2045_v38 = vor.u32 %v2142_v35, %v2042_v36  ;;  %v2140_v41 = vld [vmem:[%s2992_s4 + $0x34] sm:$0xf]  ;;  %v2034_v42 = vld [vmem:[%s2992_s4 + $0x38] sm:$0xf0]  ;;  %v2033_v43 = vor.u32 %v2141_v40, %v2032_v39  ;;  %v2024_v45 = vld [vmem:[%s2992_s4 + $0x20] sm:$0xf] }
 0x526   : > { %1531 = vmatpush.bf16.msra.mxu0 %v2057_v25  ;;  %v2037_v44 = vor.u32 %v2140_v41, %v2034_v42  ;;  %v2139_v46 = vld [vmem:[%s2992_s4 + $0x24] sm:$0xf0]  ;;  %v2138_v47 = vld [vmem:[%s2992_s4 + $0x24] sm:$0xf]  ;;  %v2026_v48 = vld [vmem:[%s2992_s4 + $0x28] sm:$0xf0] }
 0x527   : > { %1544 = vmatpush.bf16.msra.mxu1 %v2061_v26  ;;  %v2025_v49 = vor.u32 %v2139_v46, %v2024_v45  ;;  %v2029_v50 = vor.u32 %v2138_v47, %v2026_v48  ;;  %v2016_v51 = vld [vmem:[%s2992_s4 + $0x10] sm:$0xf]  ;;  %v2137_v52 = vld [vmem:[%s2992_s4 + $0x14] sm:$0xf0]  ;;  %v2136_v53 = vld [vmem:[%s2992_s4 + $0x14] sm:$0xf] }
 0x528   : > { %v2018_v54 = vld [vmem:[%s2992_s4 + $0x18] sm:$0xf0]  ;;  %v2017_v55 = vor.u32 %v2137_v52, %v2016_v51  ;;  %v2008_v57 = vld [vmem:[%s2992_s4] sm:$0xf]  ;;  %v2135_v58 = vld [vmem:[%s2992_s4 + $0x4] sm:$0xf0] }
 0x529   : > { %v2021_v56 = vor.u32 %v2136_v53, %v2018_v54  ;;  %v2134_v59 = vld [vmem:[%s2992_s4 + $0x4] sm:$0xf]  ;;  %v2010_v60 = vld [vmem:[%s2992_s4 + $0x8] sm:$0xf0]  ;;  %v2009_v61 = vor.u32 %v2135_v58, %v2008_v57  ;;  %v1444_v1 = vld [vmem:[%s542_s5] sm:$0x3] }
 0x52a   : > { %1532 = vmatpush.bf16.msra.mxu0 %v2049_v31  ;;  %v1426_v62 = vld [vmem:[#allocation3] sm:$0xff]  ;;  %v2013_v63 = vor.u32 %v2134_v59, %v2010_v60  ;;  %v1446_v2 = vperm.slane %v1444_v1, 0  ;;  %v1447_v3 = vperm.slane %v1444_v1, 1 }
 0x52b   : > { %1545 = vmatpush.bf16.msra.mxu1 %v2053_v32  ;;  %v1427_v0 = vpack.c.bf16 %v1426_v62, %v1426_v62 }
 0x52e   : > { %1533 = vmatpush.bf16.msra.mxu0 %v2041_v37 }
 0x52f   : > { %1546 = vmatpush.bf16.msra.mxu1 %v2045_v38 }
 0x532   : > { %1534 = vmatpush.bf16.msra.mxu0 %v2033_v43 }
 0x533   : > { %1547 = vmatpush.bf16.msra.mxu1 %v2037_v44 }
 0x536   : > { %1535 = vmatpush.bf16.msra.mxu0 %v2025_v49 }
 0x537   : > { %1548 = vmatpush.bf16.msra.mxu1 %v2029_v50 }
 0x53a   : > { %1536 = vmatpush.bf16.msra.mxu0 %v2017_v55 }
 0x53b   : > { %1549 = vmatpush.bf16.msra.mxu1 %v2021_v56 }
 0x53e   : > { %1537 = vmatpush.bf16.msra.mxu0 %v2009_v61 }
 0x53f   : > { %1550 = vmatpush.bf16.msra.mxu1 %v2013_v63 }
 0x541   : > { %1538 = vmatmul.bf16.vlgmr.msra.gmra.mxu0 %v1427_v0 }
 0x542   : > { %1551 = vmatmul.bf16.vlgmr.msra.gmra.mxu1 %v1427_v0 }
 0x5be   : > { %v1539_v4 = vpop.f32.mrf.mxu0 }
 0x5bf   : > { %v1540_v5 = vadd.f32 %v1539_v4, %v1446_v2  ;;  %v1552_v6 = vpop.f32.mrf.mxu1 }
 0x5c0   : > { %v1553_v7 = vadd.f32 %v1552_v6, %v1447_v3 }
 0x5c1   : > { %1556 = vst [vmem:[%s3008_s12] sm:$0xff] %v1540_v5 }
 0x5c2   : > { %1557 = vst [vmem:[%s3008_s12 + $0x8] sm:$0xff] %v1553_v7 }
 0x5c6   : > { %v1541_v8 = vpop.f32.mrf.mxu0 }
 0x5c7   : > { %v1554_v9 = vpop.f32.mrf.mxu1 }
 0x5c8 PF: > { %s3209_s14 = sld [smem:[#allocation29_spill]]  ;;  %s1572_s15 = sshll.u32 %s3008_s12, 4  ;;  %s1573_s15 = int_to_ptr.vmem [resolvable:$true] %s1572_s15 }
 0x5c9   : > { %s3211_s9 = sld [smem:[#allocation46_spill]]  ;;  %s1559_s30 = scalar_lea.sflag [#allocation6], %s2989_s22 }
 0x5ce   : > { %s2150_s24 = sshll.u32 %s3209_s14, 4 }
 0x5cf   : > { %s1570_s4 = scalar_lea.hbm %s3211_s9, %s2150_s24  ;;  %s2562_s5 = scalar_lea.hbm %s3211_s9, 48 }
 0x5d0   : > { %s1574_s16 = sshll.u32 %s1570_s4, 4  ;;  %s1575_s16 = int_to_ptr.hbm [resolvable:$true] %s1574_s16 }
 0x5d1   : > { %s2556_s20 = sshra.s32 %s1575_s16, 4  ;;  %s2557_s20 = int_to_ptr.hbm [resolvable:$true] %s2556_s20 }
 0x5d2   : > { %s2558_s23 = scalar_lea.hbm %s2557_s20, 16  ;;  %p2563_p2 = scmp.lt.s32.totalorder %s2557_s20, %s3211_s9 }
 0x5d3   : > { %p2559_p9 = scmp.ne.s32.totalorder %s2557_s20, %s2558_s23  ;;  %p2564_p4 = scmp.lt.s32.totalorder %s2562_s5, %s2558_s23 }
 0x5d5   : > { %p2560_p11 = pnand %p2559_p9, %p2890_p0  ;;  %p2565_p7 = por %p2564_p4, %p2563_p2 }
 0x5d7   : > { %p2561_p10 = pneg %p2560_p11 }
 0x5d9   : > { %p2566_p1 = pnand %p2565_p7, %p2561_p10 }
 0x5db   : > { %2569 = shalt.err (!%p2566_p1)
}
 0x5dc   : > { %2173 = dma.vmem_to_hbm [thread:$0]  (%p2890_p0), %s1573_s15, 256, %s1575_s16, %s1559_s30  }
 0x5dd PF: > { %s3212_s22 = sld [smem:[#allocation24_spill]]  ;;  %p2211_p3 = scmp.ge.s32.totalorder %s2684_s19, 2 }
 0x5df   : > { %p2199_p5 = pnand %p2211_p3, %p2899_p6 }
 0x5e1   : > { %p2200_p12 = pneg %p2199_p5 }
 0x5e3   : > { %s1586_s0 = sand.u32 1, %s3212_s22  }
 0x5e4   : > { %s1587_s6 = scalar_lea.sflag [#allocation6], %s1586_s0 }
 0x5e5   : > { %2639 = dma.done.wait (%p2200_p12), %s1587_s6, 256  }
 0x5e6   : > { %2641 = vsyncadd (%p2200_p12), %s1587_s6, 4294967040  ;;  %s30_s19 = sadd.s32 1, %s2684_s19   ;;  %s3214_s30 = sld [smem:[#allocation25_spill]] }
 0x5e7   : > { %p27_p13 = scmp.ge.s32.totalorder %s30_s19, 11   ;;  %s3215_s17 = sld [smem:[#allocation34_spill]] }
 0x5e8   : > { %s3216_s12 = sld [smem:[#allocation26_spill]]  ;;  %s3222_s10 = smov %s2652_s11 }
 0x5e9   : > { %s3217_s13 = sld [smem:[#allocation27_spill]]  ;;  %s3224_s16 = smov %s2680_s18 }
 0x5ea   : > { %s3218_s14 = sld [smem:[#allocation35_spill]] }
 0x5eb   : > { %s3219_s15 = sld [smem:[#allocation30_spill]] }
 0x5ec   : > { %s3220_s27 = sld [smem:[#allocation31_spill]] }
 0x5ed   : > { %s3221_s2 = sld [smem:[#allocation32_spill]]  ;;  %s3223_s11 = smov %s3215_s17 }
 0x5ef   :  { %29 = sbr.rel (!%p27_p13) target bundleno = 22 (0x16), region = 168 }
 0x5f2   : > { %s3225_s17 = smov %s3220_s27 }
 0x5f3   : > { %s3226_s18 = smov %s3221_s2 }
 0x5f4   :  { %1593 = vsyncpa [#allocation5], 1 }
 0x5f5   :  { %1595 = vsyncpa [#allocation5 + $0x1], 1 }
 0x5f6   :  { %1596 = vsyncpa [#allocation8], 1 }
 0x5f7   :  { %1598 = vsyncpa [#allocation8 + $0x1], 1 }
 0x5f8   :  { %1599 = vsyncpa [#allocation11], 1 }
 0x5f9   :  { %1600 = vsyncpa [#allocation14], 1 }
 0x5fa   :  { %1601 = vsyncpa [#allocation6], 1 }
 0x5fb   :  { %1603 = vsyncpa [#allocation6 + $0x1], 1 }

</bundles_post_ra>
